<compile_context>
chip_gen: v7x
topology: tpu7x:2x2x1
jax: 0.10.0
libtpu: 0.0.40
codegen_flags: <defaults>
</compile_context>

<pallas_src>
import jax
import jax.numpy as jnp
from jax import lax
from jax.experimental import pallas as pl
from jax.experimental.pallas import tpu as pltpu


def _round_up(v, m):
    return (v + m - 1) // m * m


def _pick_strip_rows(Ho, W, Cp, Kp, KH, itemsize=4,
                     target_bytes=6 * 1024 * 1024, max_rows=None):
    """Largest divisor of Ho whose per-step VMEM footprint fits `target_bytes`.

    Keeps blocks in the few-MiB sweet spot and inside the default scoped VMEM on
    v5e (16 MiB) / v6e (32 MiB) / v7x (32 MiB of 64 MiB physical).
    """
    # rough per-output-row footprint: double-buffered input strip + halo + output
    # strip + f32 window-assembly scratch (weights are negligible).
    per_row = (2 * W * Cp + 2 * W * Kp + W * Cp) * itemsize
    budget = max(1, target_bytes // max(per_row, 1))
    if max_rows is not None:
        budget = min(budget, max_rows)
    budget = min(int(budget), Ho)
    best = 1
    for d in range(1, budget + 1):
        if Ho % d == 0:
            best = d
    return best


def _sepconv_kernel(xa_ref, xb_ref, wdw_ref, scale_ref, shift_ref, wpw_ref,
                    o_ref, xwin_ref):
    """One (batch, row-strip) grid step.

    xa_ref   : (1, strip_ho, W, Cp)        input strip (top rows of the conv window)
    xb_ref   : (1, 1, halo_rows, W, Cp)    pre-gathered (KH-1)-row halo below the strip
    wdw_ref  : (KH, KW, Cp)                depthwise taps (f32)
    scale_ref: (1, 1, Cp)                  folded BN scale  = gamma / sqrt(var+eps)
    shift_ref: (1, 1, Cp)                  folded shift     = (b_dw - mean)*scale + beta
    wpw_ref  : (Cp, Kp)                    pointwise weights (bf16 MXU operand)
    o_ref    : (1, strip_ho, Wo, Kp)       output strip (lane-dense: Kp % 128 == 0)
    xwin_ref : (strip_ho + KH - 1, W, Cp)  f32 scratch: assembled strip+halo window
    """
    KH, KW, Cp = wdw_ref.shape
    strip_ho, Wo, Kp = o_ref.shape[1], o_ref.shape[2], o_ref.shape[3]
    halo = KH - 1

    # ---- assemble the strip + halo window once, in f32 ----
    xwin_ref[0:strip_ho] = xa_ref[0].astype(jnp.float32)
    if halo > 0:
        xwin_ref[strip_ho:strip_ho + halo] = xb_ref[0, 0].astype(jnp.float32)
    x = xwin_ref[...]                                   # (strip_ho + halo, W, Cp)

    wdw = wdw_ref[...]                                  # hoisted single load of all taps

    # ---- depthwise KHxKW, stride=1, padding=0 (shift-and-accumulate on the VPU, f32) ----
    # W-shifted view is hoisted out of the kh loop (3 unaligned slices instead of 9);
    # the kh shift is a cheap leading-dim slice.
    acc = jnp.zeros((strip_ho, Wo, Cp), jnp.float32)
    for kw in range(KW):
        x_kw = x[:, kw:kw + Wo, :]
        for kh in range(KH):
            acc = acc + x_kw[kh:kh + strip_ho, :, :] * wdw[kh, kw].reshape(1, 1, Cp)

    # ---- fused depthwise-bias + BatchNorm (per-channel affine) ----
    y = acc * scale_ref[...] + shift_ref[...]           # (strip_ho, Wo, Cp)
    yb = y.astype(jnp.bfloat16)

    # ---- pointwise 1x1 conv on the MXU: (Wo, Cp) @ (Cp, Kp) per output row ----
    wpw = wpw_ref[...]
    for h in range(strip_ho):
        row = jnp.dot(yb[h], wpw, preferred_element_type=jnp.float32)
        o_ref[0, h] = row.astype(o_ref.dtype)


def separable_conv2d_nhwc(x_nhwc, w_dw, b_dw, bn_gamma, bn_beta, bn_mean, bn_var,
                          w_pw, *, eps=1e-5, max_strip_rows=None):
    """Fused SeparableConv2d forward (inference BN), NHWC in / NHWC out (no transposes).

    x_nhwc : (N, H, W, Cin)
    w_dw   : (Cin, 1, KH, KW)   depthwise conv weight (groups=Cin)
    b_dw   : (Cin,)             depthwise conv bias
    bn_*   : (Cin,)             BatchNorm2d affine params / running stats
    w_pw   : (Cout, Cin, 1, 1)  pointwise conv weight (bias=False)
    Returns (N, Ho, Wo, Cout) with Ho=H-KH+1, Wo=W-KW+1 (stride=1, padding=0, dilation=1).
    """
    N, H, W, Cin = x_nhwc.shape
    Cout = w_pw.shape[0]
    KH, KW = w_dw.shape[2], w_dw.shape[3]
    assert H >= KH and W >= KW, "valid (padding=0) conv needs H>=KH and W>=KW"
    Ho, Wo = H - KH + 1, W - KW + 1
    halo = KH - 1

    # Lane-dense channel axes: pad Cin/Cout up to a multiple of 128.
    Cp, Kp = _round_up(Cin, 128), _round_up(Cout, 128)

    x_p = x_nhwc
    if Cp != Cin:
        x_p = jnp.pad(x_nhwc, ((0, 0), (0, 0), (0, 0), (0, Cp - Cin)))

    # Fold depthwise bias + BN (running stats) into per-channel scale/shift; pads are 0.
    inv_std = 1.0 / jnp.sqrt(bn_var.astype(jnp.float32) + eps)
    scale_c = bn_gamma.astype(jnp.float32) * inv_std
    shift_c = (b_dw.astype(jnp.float32) - bn_mean.astype(jnp.float32)) * scale_c \
        + bn_beta.astype(jnp.float32)
    scale_p = jnp.pad(scale_c, (0, Cp - Cin)).reshape(1, 1, Cp)
    shift_p = jnp.pad(shift_c, (0, Cp - Cin)).reshape(1, 1, Cp)

    # Depthwise weight (Cin,1,KH,KW) -> (KH,KW,Cp) f32.
    wdw_p = jnp.transpose(w_dw[:, 0, :, :], (1, 2, 0)).astype(jnp.float32)
    wdw_p = jnp.pad(wdw_p, ((0, 0), (0, 0), (0, Cp - Cin)))
    # Pointwise weight (Cout,Cin,1,1) -> (Cp,Kp) bf16 (MXU operand).
    wpw_p = jnp.transpose(w_pw[:, :, 0, 0], (1, 0)).astype(jnp.float32)
    wpw_p = jnp.pad(wpw_p, ((0, Cp - Cin), (0, Kp - Cout))).astype(jnp.bfloat16)

    # Row-strip tiling: strip_ho output rows per grid step (strip_ho | Ho).
    strip_ho = _pick_strip_rows(Ho, W, Cp, Kp, KH,
                                itemsize=x_p.dtype.itemsize,
                                max_rows=max_strip_rows)
    S = Ho // strip_ho

    # Pre-gathered (KH-1)-row halos below every strip: (N, S, halo_rows, W, Cp).
    # This keeps all BlockSpecs plain Blocked specs (no overlapping-window indexing)
    # at the cost of duplicating only KH-1 rows per strip in HBM.
    halo_rows = max(halo, 1)
    if halo > 0:
        rows = (jnp.arange(1, S + 1)[:, None] * strip_ho
                + jnp.arange(halo)[None, :]).reshape(-1)
        x_halo = x_p[:, rows, :, :].reshape(N, S, halo, W, Cp)
    else:
        x_halo = jnp.zeros((N, S, 1, W, Cp), x_p.dtype)   # dummy, never read

    out_p = pl.pallas_call(
        _sepconv_kernel,
        out_shape=jax.ShapeDtypeStruct((N, Ho, Wo, Kp), jnp.float32),
        grid=(N, S),
        in_specs=[
            pl.BlockSpec((1, strip_ho, W, Cp), lambda n, s: (n, s, 0, 0)),
            pl.BlockSpec((1, 1, halo_rows, W, Cp), lambda n, s: (n, s, 0, 0, 0)),
            pl.BlockSpec((KH, KW, Cp), lambda n, s: (0, 0, 0)),
            pl.BlockSpec((1, 1, Cp), lambda n, s: (0, 0, 0)),
            pl.BlockSpec((1, 1, Cp), lambda n, s: (0, 0, 0)),
            pl.BlockSpec((Cp, Kp), lambda n, s: (0, 0)),
        ],
        out_specs=pl.BlockSpec((1, strip_ho, Wo, Kp), lambda n, s: (n, s, 0, 0)),
        scratch_shapes=[pltpu.VMEM((strip_ho + halo, W, Cp), jnp.float32)],
        compiler_params=pltpu.CompilerParams(
            dimension_semantics=("parallel", "parallel")),
    )(x_p, x_halo, wdw_p, scale_p, shift_p, wpw_p)

    return out_p[..., :Cout] if Kp != Cout else out_p


def separable_conv2d(x_nchw, w_dw, b_dw, bn_gamma, bn_beta, bn_mean, bn_var, w_pw,
                     *, eps=1e-5, max_strip_rows=None):
    """PyTorch-layout adapter: NCHW in / NCHW out.

    Prefer `separable_conv2d_nhwc` in production: the NCHW<->NHWC transposes below are
    full HBM round trips of the activation tensor and exist only for PyTorch parity.
    """
    x = jnp.transpose(x_nchw, (0, 2, 3, 1))
    out = separable_conv2d_nhwc(x, w_dw, b_dw, bn_gamma, bn_beta, bn_mean, bn_var,
                                w_pw, eps=eps, max_strip_rows=max_strip_rows)
    return jnp.transpose(out, (0, 3, 1, 2))


def _reference(x_nchw, w_dw, b_dw, bn_gamma, bn_beta, bn_mean, bn_var, w_pw, eps=1e-5):
    """Pure-JAX f32 reference (lax conv) for correctness checking."""
    N, Cin, H, W = x_nchw.shape
    x = jnp.transpose(x_nchw, (0, 2, 3, 1))
    w_hwio = jnp.transpose(w_dw, (2, 3, 1, 0))  # (KH,KW,1,Cin)
    dw = lax.conv_general_dilated(
        x, w_hwio, window_strides=(1, 1), padding="VALID",
        dimension_numbers=("NHWC", "HWIO", "NHWC"), feature_group_count=Cin)
    dw = dw + b_dw.reshape(1, 1, 1, Cin)
    bn = (dw - bn_mean) / jnp.sqrt(bn_var + eps) * bn_gamma + bn_beta
    pw = jnp.einsum("nhwc,oc->nhwo", bn, w_pw[:, :, 0, 0])
    return jnp.transpose(pw, (0, 3, 1, 2))


if __name__ == "__main__":
    # Small deterministic problem: N=2, Cin=4, H=W=16, k=3 -> Ho=Wo=14, Cout=8
    N, Cin, Cout, H, W, K = 2, 4, 8, 16, 16, 3

    key = jax.random.PRNGKey(0)
    k = jax.random.split(key, 7)
    x = jax.random.normal(k[0], (N, Cin, H, W), jnp.float32)
    w_dw = jax.random.normal(k[1], (Cin, 1, K, K), jnp.float32) * 0.2
    b_dw = jax.random.normal(k[2], (Cin,), jnp.float32) * 0.1
    bn_gamma = 1.0 + 0.1 * jax.random.normal(k[3], (Cin,), jnp.float32)
    bn_beta = 0.1 * jax.random.normal(k[4], (Cin,), jnp.float32)
    bn_mean = 0.05 * jax.random.normal(k[5], (Cin,), jnp.float32)
    bn_var = jnp.abs(1.0 + 0.1 * jax.random.normal(k[6], (Cin,), jnp.float32))
    w_pw = jax.random.normal(jax.random.PRNGKey(1), (Cout, Cin, 1, 1), jnp.float32) * 0.3

    # max_strip_rows=7 -> two row strips per image, so the (batch x strip) grid and the
    # halo assembly path are exercised even at this tiny size.
    out = separable_conv2d(x, w_dw, b_dw, bn_gamma, bn_beta, bn_mean, bn_var, w_pw,
                           max_strip_rows=7)
    out = jax.block_until_ready(out)

    ref = _reference(x, w_dw, b_dw, bn_gamma, bn_beta, bn_mean, bn_var, w_pw)
    assert out.shape == (N, Cout, H - K + 1, W - K + 1), out.shape
    # The pointwise conv runs with bf16 MXU operands (f32 accumulation), so compare
    # against the f32 reference with a bf16-appropriate tolerance.
    max_err = float(jnp.max(jnp.abs(out - ref)))
    assert jnp.allclose(out, ref, atol=5e-2, rtol=5e-2), max_err

    print("KERNEL_OK")
</pallas_src>

<mosaic_0001>
module attributes {stable_mosaic.version = 11 : i64} {
  func.func @_sepconv_kernel(%arg0: i32, %arg1: i32, %arg2: memref<1x7x16x128xf32, #tpu.memory_space<vmem>>, %arg3: memref<1x1x2x16x128xf32, #tpu.memory_space<vmem>>, %arg4: memref<3x3x128xf32, #tpu.memory_space<vmem>>, %arg5: memref<1x1x128xf32, #tpu.memory_space<vmem>>, %arg6: memref<1x1x128xf32, #tpu.memory_space<vmem>>, %arg7: memref<128x128xbf16, #tpu.memory_space<vmem>>, %arg8: memref<1x7x14x128xf32, #tpu.memory_space<vmem>>, %arg9: memref<9x16x128xf32, #tpu.memory_space<vmem>>) attributes {dimension_semantics = [#tpu.dimension_semantics<parallel>, #tpu.dimension_semantics<parallel>], iteration_bounds = array<i64: 2, 2>, scalar_prefetch = 0 : i64, scratch_operands = 1 : i64, tpu.core_type = #tpu.core_type<tc>, window_params = [{transform_indices = @transform_0, window_bounds = array<i64: 1, 7, 16, 128>}, {transform_indices = @transform_1, window_bounds = array<i64: 1, 1, 2, 16, 128>}, {pipeline_mode = #tpu.pipeline_mode<synchronous>, transform_indices = @transform_2, window_bounds = array<i64: 3, 3, 128>}, {pipeline_mode = #tpu.pipeline_mode<synchronous>, transform_indices = @transform_3, window_bounds = array<i64: 1, 1, 128>}, {pipeline_mode = #tpu.pipeline_mode<synchronous>, transform_indices = @transform_4, window_bounds = array<i64: 1, 1, 128>}, {pipeline_mode = #tpu.pipeline_mode<synchronous>, transform_indices = @transform_5, window_bounds = array<i64: 128, 128>}, {transform_indices = @transform_6, window_bounds = array<i64: 1, 7, 14, 128>}]} {
    %c0 = arith.constant 0 : index
    %c0_0 = arith.constant 0 : index
    %c0_1 = arith.constant 0 : index
    %c0_2 = arith.constant 0 : index
    %0 = vector.load %arg2[%c0, %c0_0, %c0_1, %c0_2] : memref<1x7x16x128xf32, #tpu.memory_space<vmem>>, vector<1x7x16x128xf32>
    %1 = vector.shape_cast %0 : vector<1x7x16x128xf32> to vector<7x16x128xf32>
    %c0_3 = arith.constant 0 : index
    %c0_4 = arith.constant 0 : index
    %c0_5 = arith.constant 0 : index
    %2 = vector.load %arg9[%c0_3, %c0_4, %c0_5] : memref<9x16x128xf32, #tpu.memory_space<vmem>>, vector<7x16x128xf32>
    tpu.vector_store %arg9[%c0_3, %c0_4, %c0_5], %1 {strides = array<i32>} : memref<9x16x128xf32, #tpu.memory_space<vmem>>, vector<7x16x128xf32>,
    %c0_6 = arith.constant 0 : index
    %c0_7 = arith.constant 0 : index
    %c0_8 = arith.constant 0 : index
    %c0_9 = arith.constant 0 : index
    %c0_10 = arith.constant 0 : index
    %3 = vector.load %arg3[%c0_6, %c0_7, %c0_8, %c0_9, %c0_10] : memref<1x1x2x16x128xf32, #tpu.memory_space<vmem>>, vector<1x1x2x16x128xf32>
    %4 = vector.shape_cast %3 : vector<1x1x2x16x128xf32> to vector<2x16x128xf32>
    %c7 = arith.constant 7 : index
    %c0_11 = arith.constant 0 : index
    %c0_12 = arith.constant 0 : index
    %5 = vector.load %arg9[%c7, %c0_11, %c0_12] : memref<9x16x128xf32, #tpu.memory_space<vmem>>, vector<2x16x128xf32>
    tpu.vector_store %arg9[%c7, %c0_11, %c0_12], %4 {strides = array<i32>} : memref<9x16x128xf32, #tpu.memory_space<vmem>>, vector<2x16x128xf32>,
    %c0_13 = arith.constant 0 : index
    %c0_14 = arith.constant 0 : index
    %c0_15 = arith.constant 0 : index
    %6 = vector.load %arg9[%c0_13, %c0_14, %c0_15] : memref<9x16x128xf32, #tpu.memory_space<vmem>>, vector<9x16x128xf32>
    %c0_16 = arith.constant 0 : index
    %c0_17 = arith.constant 0 : index
    %c0_18 = arith.constant 0 : index
    %7 = vector.load %arg4[%c0_16, %c0_17, %c0_18] : memref<3x3x128xf32, #tpu.memory_space<vmem>>, vector<3x3x128xf32>
    %cst = arith.constant 0.000000e+00 : f32
    %8 = vector.broadcast %cst : f32 to vector<7x14x128xf32>
    %9 = vector.extract_strided_slice %6 {offsets = [0, 0, 0], sizes = [9, 14, 128], strides = [1, 1, 1]} : vector<9x16x128xf32> to vector<9x14x128xf32>
    %10 = vector.extract_strided_slice %9 {offsets = [0, 0, 0], sizes = [7, 14, 128], strides = [1, 1, 1]} : vector<9x14x128xf32> to vector<7x14x128xf32>
    %11 = vector.extract_strided_slice %7 {offsets = [0, 0, 0], sizes = [1, 1, 128], strides = [1, 1, 1]} : vector<3x3x128xf32> to vector<1x1x128xf32>
    %12 = vector.shape_cast %11 : vector<1x1x128xf32> to vector<128xf32>
    %13 = vector.shape_cast %12 : vector<128xf32> to vector<1x1x128xf32>
    %14 = vector.broadcast %13 : vector<1x1x128xf32> to vector<7x14x128xf32>
    %15 = arith.mulf %10, %14 : vector<7x14x128xf32>
    %16 = arith.addf %8, %15 : vector<7x14x128xf32>
    %17 = vector.extract_strided_slice %9 {offsets = [1, 0, 0], sizes = [7, 14, 128], strides = [1, 1, 1]} : vector<9x14x128xf32> to vector<7x14x128xf32>
    %18 = vector.extract_strided_slice %7 {offsets = [1, 0, 0], sizes = [1, 1, 128], strides = [1, 1, 1]} : vector<3x3x128xf32> to vector<1x1x128xf32>
    %19 = vector.shape_cast %18 : vector<1x1x128xf32> to vector<128xf32>
    %20 = vector.shape_cast %19 : vector<128xf32> to vector<1x1x128xf32>
    %21 = vector.broadcast %20 : vector<1x1x128xf32> to vector<7x14x128xf32>
    %22 = arith.mulf %17, %21 : vector<7x14x128xf32>
    %23 = arith.addf %16, %22 : vector<7x14x128xf32>
    %24 = vector.extract_strided_slice %9 {offsets = [2, 0, 0], sizes = [7, 14, 128], strides = [1, 1, 1]} : vector<9x14x128xf32> to vector<7x14x128xf32>
    %25 = vector.extract_strided_slice %7 {offsets = [2, 0, 0], sizes = [1, 1, 128], strides = [1, 1, 1]} : vector<3x3x128xf32> to vector<1x1x128xf32>
    %26 = vector.shape_cast %25 : vector<1x1x128xf32> to vector<128xf32>
    %27 = vector.shape_cast %26 : vector<128xf32> to vector<1x1x128xf32>
    %28 = vector.broadcast %27 : vector<1x1x128xf32> to vector<7x14x128xf32>
    %29 = arith.mulf %24, %28 : vector<7x14x128xf32>
    %30 = arith.addf %23, %29 : vector<7x14x128xf32>
    %31 = vector.extract_strided_slice %6 {offsets = [0, 1, 0], sizes = [9, 14, 128], strides = [1, 1, 1]} : vector<9x16x128xf32> to vector<9x14x128xf32>
    %32 = vector.extract_strided_slice %31 {offsets = [0, 0, 0], sizes = [7, 14, 128], strides = [1, 1, 1]} : vector<9x14x128xf32> to vector<7x14x128xf32>
    %33 = vector.extract_strided_slice %7 {offsets = [0, 1, 0], sizes = [1, 1, 128], strides = [1, 1, 1]} : vector<3x3x128xf32> to vector<1x1x128xf32>
    %34 = vector.shape_cast %33 : vector<1x1x128xf32> to vector<128xf32>
    %35 = vector.shape_cast %34 : vector<128xf32> to vector<1x1x128xf32>
    %36 = vector.broadcast %35 : vector<1x1x128xf32> to vector<7x14x128xf32>
    %37 = arith.mulf %32, %36 : vector<7x14x128xf32>
    %38 = arith.addf %30, %37 : vector<7x14x128xf32>
    %39 = vector.extract_strided_slice %31 {offsets = [1, 0, 0], sizes = [7, 14, 128], strides = [1, 1, 1]} : vector<9x14x128xf32> to vector<7x14x128xf32>
    %40 = vector.extract_strided_slice %7 {offsets = [1, 1, 0], sizes = [1, 1, 128], strides = [1, 1, 1]} : vector<3x3x128xf32> to vector<1x1x128xf32>
    %41 = vector.shape_cast %40 : vector<1x1x128xf32> to vector<128xf32>
    %42 = vector.shape_cast %41 : vector<128xf32> to vector<1x1x128xf32>
    %43 = vector.broadcast %42 : vector<1x1x128xf32> to vector<7x14x128xf32>
    %44 = arith.mulf %39, %43 : vector<7x14x128xf32>
    %45 = arith.addf %38, %44 : vector<7x14x128xf32>
    %46 = vector.extract_strided_slice %31 {offsets = [2, 0, 0], sizes = [7, 14, 128], strides = [1, 1, 1]} : vector<9x14x128xf32> to vector<7x14x128xf32>
    %47 = vector.extract_strided_slice %7 {offsets = [2, 1, 0], sizes = [1, 1, 128], strides = [1, 1, 1]} : vector<3x3x128xf32> to vector<1x1x128xf32>
    %48 = vector.shape_cast %47 : vector<1x1x128xf32> to vector<128xf32>
    %49 = vector.shape_cast %48 : vector<128xf32> to vector<1x1x128xf32>
    %50 = vector.broadcast %49 : vector<1x1x128xf32> to vector<7x14x128xf32>
    %51 = arith.mulf %46, %50 : vector<7x14x128xf32>
    %52 = arith.addf %45, %51 : vector<7x14x128xf32>
    %53 = vector.extract_strided_slice %6 {offsets = [0, 2, 0], sizes = [9, 14, 128], strides = [1, 1, 1]} : vector<9x16x128xf32> to vector<9x14x128xf32>
    %54 = vector.extract_strided_slice %53 {offsets = [0, 0, 0], sizes = [7, 14, 128], strides = [1, 1, 1]} : vector<9x14x128xf32> to vector<7x14x128xf32>
    %55 = vector.extract_strided_slice %7 {offsets = [0, 2, 0], sizes = [1, 1, 128], strides = [1, 1, 1]} : vector<3x3x128xf32> to vector<1x1x128xf32>
    %56 = vector.shape_cast %55 : vector<1x1x128xf32> to vector<128xf32>
    %57 = vector.shape_cast %56 : vector<128xf32> to vector<1x1x128xf32>
    %58 = vector.broadcast %57 : vector<1x1x128xf32> to vector<7x14x128xf32>
    %59 = arith.mulf %54, %58 : vector<7x14x128xf32>
    %60 = arith.addf %52, %59 : vector<7x14x128xf32>
    %61 = vector.extract_strided_slice %53 {offsets = [1, 0, 0], sizes = [7, 14, 128], strides = [1, 1, 1]} : vector<9x14x128xf32> to vector<7x14x128xf32>
    %62 = vector.extract_strided_slice %7 {offsets = [1, 2, 0], sizes = [1, 1, 128], strides = [1, 1, 1]} : vector<3x3x128xf32> to vector<1x1x128xf32>
    %63 = vector.shape_cast %62 : vector<1x1x128xf32> to vector<128xf32>
    %64 = vector.shape_cast %63 : vector<128xf32> to vector<1x1x128xf32>
    %65 = vector.broadcast %64 : vector<1x1x128xf32> to vector<7x14x128xf32>
    %66 = arith.mulf %61, %65 : vector<7x14x128xf32>
    %67 = arith.addf %60, %66 : vector<7x14x128xf32>
    %68 = vector.extract_strided_slice %53 {offsets = [2, 0, 0], sizes = [7, 14, 128], strides = [1, 1, 1]} : vector<9x14x128xf32> to vector<7x14x128xf32>
    %69 = vector.extract_strided_slice %7 {offsets = [2, 2, 0], sizes = [1, 1, 128], strides = [1, 1, 1]} : vector<3x3x128xf32> to vector<1x1x128xf32>
    %70 = vector.shape_cast %69 : vector<1x1x128xf32> to vector<128xf32>
    %71 = vector.shape_cast %70 : vector<128xf32> to vector<1x1x128xf32>
    %72 = vector.broadcast %71 : vector<1x1x128xf32> to vector<7x14x128xf32>
    %73 = arith.mulf %68, %72 : vector<7x14x128xf32>
    %74 = arith.addf %67, %73 : vector<7x14x128xf32>
    %c0_19 = arith.constant 0 : index
    %c0_20 = arith.constant 0 : index
    %c0_21 = arith.constant 0 : index
    %75 = vector.load %arg5[%c0_19, %c0_20, %c0_21] : memref<1x1x128xf32, #tpu.memory_space<vmem>>, vector<1x1x128xf32>
    %76 = vector.broadcast %75 : vector<1x1x128xf32> to vector<7x14x128xf32>
    %77 = arith.mulf %74, %76 : vector<7x14x128xf32>
    %c0_22 = arith.constant 0 : index
    %c0_23 = arith.constant 0 : index
    %c0_24 = arith.constant 0 : index
    %78 = vector.load %arg6[%c0_22, %c0_23, %c0_24] : memref<1x1x128xf32, #tpu.memory_space<vmem>>, vector<1x1x128xf32>
    %79 = vector.broadcast %78 : vector<1x1x128xf32> to vector<7x14x128xf32>
    %80 = arith.addf %77, %79 : vector<7x14x128xf32>
    %81 = arith.truncf %80 : vector<7x14x128xf32> to vector<7x14x128xbf16>
    %c0_25 = arith.constant 0 : index
    %c0_26 = arith.constant 0 : index
    %82 = vector.load %arg7[%c0_25, %c0_26] : memref<128x128xbf16, #tpu.memory_space<vmem>>, vector<128x128xbf16>
    %83 = vector.extract_strided_slice %81 {offsets = [0, 0, 0], sizes = [1, 14, 128], strides = [1, 1, 1]} : vector<7x14x128xbf16> to vector<1x14x128xbf16>
    %84 = vector.shape_cast %83 : vector<1x14x128xbf16> to vector<14x128xbf16>
    %cst_27 = arith.constant dense<0.000000e+00> : vector<14x128xf32>
    %85 = tpu.matmul %84, %82, %cst_27 {dimension_numbers = #tpu.dot_dimension_numbers<[1], [0], [0], [1], [0, 0, 1, 1], [], []>} : vector<14x128xbf16>, vector<128x128xbf16>, vector<14x128xf32> -> vector<14x128xf32>
    %c0_28 = arith.constant 0 : index
    %c0_29 = arith.constant 0 : index
    %c0_30 = arith.constant 0 : index
    %c0_31 = arith.constant 0 : index
    %86 = vector.load %arg8[%c0_28, %c0_29, %c0_30, %c0_31] : memref<1x7x14x128xf32, #tpu.memory_space<vmem>>, vector<1x1x14x128xf32>
    %87 = vector.shape_cast %86 : vector<1x1x14x128xf32> to vector<14x128xf32>
    %88 = vector.shape_cast %85 : vector<14x128xf32> to vector<1x1x14x128xf32>
    tpu.vector_store %arg8[%c0_28, %c0_29, %c0_30, %c0_31], %88 {strides = array<i32>} : memref<1x7x14x128xf32, #tpu.memory_space<vmem>>, vector<1x1x14x128xf32>,
    %89 = vector.extract_strided_slice %81 {offsets = [1, 0, 0], sizes = [1, 14, 128], strides = [1, 1, 1]} : vector<7x14x128xbf16> to vector<1x14x128xbf16>
    %90 = vector.shape_cast %89 : vector<1x14x128xbf16> to vector<14x128xbf16>
    %cst_32 = arith.constant dense<0.000000e+00> : vector<14x128xf32>
    %91 = tpu.matmul %90, %82, %cst_32 {dimension_numbers = #tpu.dot_dimension_numbers<[1], [0], [0], [1], [0, 0, 1, 1], [], []>} : vector<14x128xbf16>, vector<128x128xbf16>, vector<14x128xf32> -> vector<14x128xf32>
    %c0_33 = arith.constant 0 : index
    %c1 = arith.constant 1 : index
    %c0_34 = arith.constant 0 : index
    %c0_35 = arith.constant 0 : index
    %92 = vector.load %arg8[%c0_33, %c1, %c0_34, %c0_35] : memref<1x7x14x128xf32, #tpu.memory_space<vmem>>, vector<1x1x14x128xf32>
    %93 = vector.shape_cast %92 : vector<1x1x14x128xf32> to vector<14x128xf32>
    %94 = vector.shape_cast %91 : vector<14x128xf32> to vector<1x1x14x128xf32>
    tpu.vector_store %arg8[%c0_33, %c1, %c0_34, %c0_35], %94 {strides = array<i32>} : memref<1x7x14x128xf32, #tpu.memory_space<vmem>>, vector<1x1x14x128xf32>,
    %95 = vector.extract_strided_slice %81 {offsets = [2, 0, 0], sizes = [1, 14, 128], strides = [1, 1, 1]} : vector<7x14x128xbf16> to vector<1x14x128xbf16>
    %96 = vector.shape_cast %95 : vector<1x14x128xbf16> to vector<14x128xbf16>
    %cst_36 = arith.constant dense<0.000000e+00> : vector<14x128xf32>
    %97 = tpu.matmul %96, %82, %cst_36 {dimension_numbers = #tpu.dot_dimension_numbers<[1], [0], [0], [1], [0, 0, 1, 1], [], []>} : vector<14x128xbf16>, vector<128x128xbf16>, vector<14x128xf32> -> vector<14x128xf32>
    %c0_37 = arith.constant 0 : index
    %c2 = arith.constant 2 : index
    %c0_38 = arith.constant 0 : index
    %c0_39 = arith.constant 0 : index
    %98 = vector.load %arg8[%c0_37, %c2, %c0_38, %c0_39] : memref<1x7x14x128xf32, #tpu.memory_space<vmem>>, vector<1x1x14x128xf32>
    %99 = vector.shape_cast %98 : vector<1x1x14x128xf32> to vector<14x128xf32>
    %100 = vector.shape_cast %97 : vector<14x128xf32> to vector<1x1x14x128xf32>
    tpu.vector_store %arg8[%c0_37, %c2, %c0_38, %c0_39], %100 {strides = array<i32>} : memref<1x7x14x128xf32, #tpu.memory_space<vmem>>, vector<1x1x14x128xf32>,
    %101 = vector.extract_strided_slice %81 {offsets = [3, 0, 0], sizes = [1, 14, 128], strides = [1, 1, 1]} : vector<7x14x128xbf16> to vector<1x14x128xbf16>
    %102 = vector.shape_cast %101 : vector<1x14x128xbf16> to vector<14x128xbf16>
    %cst_40 = arith.constant dense<0.000000e+00> : vector<14x128xf32>
    %103 = tpu.matmul %102, %82, %cst_40 {dimension_numbers = #tpu.dot_dimension_numbers<[1], [0], [0], [1], [0, 0, 1, 1], [], []>} : vector<14x128xbf16>, vector<128x128xbf16>, vector<14x128xf32> -> vector<14x128xf32>
    %c0_41 = arith.constant 0 : index
    %c3 = arith.constant 3 : index
    %c0_42 = arith.constant 0 : index
    %c0_43 = arith.constant 0 : index
    %104 = vector.load %arg8[%c0_41, %c3, %c0_42, %c0_43] : memref<1x7x14x128xf32, #tpu.memory_space<vmem>>, vector<1x1x14x128xf32>
    %105 = vector.shape_cast %104 : vector<1x1x14x128xf32> to vector<14x128xf32>
    %106 = vector.shape_cast %103 : vector<14x128xf32> to vector<1x1x14x128xf32>
    tpu.vector_store %arg8[%c0_41, %c3, %c0_42, %c0_43], %106 {strides = array<i32>} : memref<1x7x14x128xf32, #tpu.memory_space<vmem>>, vector<1x1x14x128xf32>,
    %107 = vector.extract_strided_slice %81 {offsets = [4, 0, 0], sizes = [1, 14, 128], strides = [1, 1, 1]} : vector<7x14x128xbf16> to vector<1x14x128xbf16>
    %108 = vector.shape_cast %107 : vector<1x14x128xbf16> to vector<14x128xbf16>
    %cst_44 = arith.constant dense<0.000000e+00> : vector<14x128xf32>
    %109 = tpu.matmul %108, %82, %cst_44 {dimension_numbers = #tpu.dot_dimension_numbers<[1], [0], [0], [1], [0, 0, 1, 1], [], []>} : vector<14x128xbf16>, vector<128x128xbf16>, vector<14x128xf32> -> vector<14x128xf32>
    %c0_45 = arith.constant 0 : index
    %c4 = arith.constant 4 : index
    %c0_46 = arith.constant 0 : index
    %c0_47 = arith.constant 0 : index
    %110 = vector.load %arg8[%c0_45, %c4, %c0_46, %c0_47] : memref<1x7x14x128xf32, #tpu.memory_space<vmem>>, vector<1x1x14x128xf32>
    %111 = vector.shape_cast %110 : vector<1x1x14x128xf32> to vector<14x128xf32>
    %112 = vector.shape_cast %109 : vector<14x128xf32> to vector<1x1x14x128xf32>
    tpu.vector_store %arg8[%c0_45, %c4, %c0_46, %c0_47], %112 {strides = array<i32>} : memref<1x7x14x128xf32, #tpu.memory_space<vmem>>, vector<1x1x14x128xf32>,
    %113 = vector.extract_strided_slice %81 {offsets = [5, 0, 0], sizes = [1, 14, 128], strides = [1, 1, 1]} : vector<7x14x128xbf16> to vector<1x14x128xbf16>
    %114 = vector.shape_cast %113 : vector<1x14x128xbf16> to vector<14x128xbf16>
    %cst_48 = arith.constant dense<0.000000e+00> : vector<14x128xf32>
    %115 = tpu.matmul %114, %82, %cst_48 {dimension_numbers = #tpu.dot_dimension_numbers<[1], [0], [0], [1], [0, 0, 1, 1], [], []>} : vector<14x128xbf16>, vector<128x128xbf16>, vector<14x128xf32> -> vector<14x128xf32>
    %c0_49 = arith.constant 0 : index
    %c5 = arith.constant 5 : index
    %c0_50 = arith.constant 0 : index
    %c0_51 = arith.constant 0 : index
    %116 = vector.load %arg8[%c0_49, %c5, %c0_50, %c0_51] : memref<1x7x14x128xf32, #tpu.memory_space<vmem>>, vector<1x1x14x128xf32>
    %117 = vector.shape_cast %116 : vector<1x1x14x128xf32> to vector<14x128xf32>
    %118 = vector.shape_cast %115 : vector<14x128xf32> to vector<1x1x14x128xf32>
    tpu.vector_store %arg8[%c0_49, %c5, %c0_50, %c0_51], %118 {strides = array<i32>} : memref<1x7x14x128xf32, #tpu.memory_space<vmem>>, vector<1x1x14x128xf32>,
    %119 = vector.extract_strided_slice %81 {offsets = [6, 0, 0], sizes = [1, 14, 128], strides = [1, 1, 1]} : vector<7x14x128xbf16> to vector<1x14x128xbf16>
    %120 = vector.shape_cast %119 : vector<1x14x128xbf16> to vector<14x128xbf16>
    %cst_52 = arith.constant dense<0.000000e+00> : vector<14x128xf32>
    %121 = tpu.matmul %120, %82, %cst_52 {dimension_numbers = #tpu.dot_dimension_numbers<[1], [0], [0], [1], [0, 0, 1, 1], [], []>} : vector<14x128xbf16>, vector<128x128xbf16>, vector<14x128xf32> -> vector<14x128xf32>
    %c0_53 = arith.constant 0 : index
    %c6 = arith.constant 6 : index
    %c0_54 = arith.constant 0 : index
    %c0_55 = arith.constant 0 : index
    %122 = vector.load %arg8[%c0_53, %c6, %c0_54, %c0_55] : memref<1x7x14x128xf32, #tpu.memory_space<vmem>>, vector<1x1x14x128xf32>
    %123 = vector.shape_cast %122 : vector<1x1x14x128xf32> to vector<14x128xf32>
    %124 = vector.shape_cast %121 : vector<14x128xf32> to vector<1x1x14x128xf32>
    tpu.vector_store %arg8[%c0_53, %c6, %c0_54, %c0_55], %124 {strides = array<i32>} : memref<1x7x14x128xf32, #tpu.memory_space<vmem>>, vector<1x1x14x128xf32>,
    return
  }
  func.func @transform_0(%arg0: i32, %arg1: i32) -> (i32, i32, i32, i32) {
    %c0_i32 = arith.constant 0 : i32
    %c0_i32_0 = arith.constant 0 : i32
    %c0_i32_1 = arith.constant 0 : i32
    return %arg0, %arg1, %c0_i32, %c0_i32_0 : i32, i32, i32, i32
  }
  func.func @transform_1(%arg0: i32, %arg1: i32) -> (i32, i32, i32, i32, i32) {
    %c0_i32 = arith.constant 0 : i32
    %c0_i32_0 = arith.constant 0 : i32
    %c0_i32_1 = arith.constant 0 : i32
    %c0_i32_2 = arith.constant 0 : i32
    return %arg0, %arg1, %c0_i32, %c0_i32_0, %c0_i32_1 : i32, i32, i32, i32, i32
  }
  func.func @transform_2(%arg0: i32, %arg1: i32) -> (i32, i32, i32) {
    %c0_i32 = arith.constant 0 : i32
    %c0_i32_0 = arith.constant 0 : i32
    %c0_i32_1 = arith.constant 0 : i32
    %c0_i32_2 = arith.constant 0 : i32
    return %c0_i32, %c0_i32_0, %c0_i32_1 : i32, i32, i32
  }
  func.func @transform_3(%arg0: i32, %arg1: i32) -> (i32, i32, i32) {
    %c0_i32 = arith.constant 0 : i32
    %c0_i32_0 = arith.constant 0 : i32
    %c0_i32_1 = arith.constant 0 : i32
    %c0_i32_2 = arith.constant 0 : i32
    return %c0_i32, %c0_i32_0, %c0_i32_1 : i32, i32, i32
  }
  func.func @transform_4(%arg0: i32, %arg1: i32) -> (i32, i32, i32) {
    %c0_i32 = arith.constant 0 : i32
    %c0_i32_0 = arith.constant 0 : i32
    %c0_i32_1 = arith.constant 0 : i32
    %c0_i32_2 = arith.constant 0 : i32
    return %c0_i32, %c0_i32_0, %c0_i32_1 : i32, i32, i32
  }
  func.func @transform_5(%arg0: i32, %arg1: i32) -> (i32, i32) {
    %c0_i32 = arith.constant 0 : i32
    %c0_i32_0 = arith.constant 0 : i32
    %c0_i32_1 = arith.constant 0 : i32
    return %c0_i32, %c0_i32_0 : i32, i32
  }
  func.func @transform_6(%arg0: i32, %arg1: i32) -> (i32, i32, i32, i32) {
    %c0_i32 = arith.constant 0 : i32
    %c0_i32_0 = arith.constant 0 : i32
    %c0_i32_1 = arith.constant 0 : i32
    return %arg0, %arg1, %c0_i32, %c0_i32_0 : i32, i32, i32, i32
  }
}

</mosaic_0001>

<bundles_post_ra>
// kernel: tpu_custom_call.1
= control target key start
LH: loop header
LB: loop body
LE: loop exit
PB: predicated region body
PF: predicated region fallthrough
CT: control target
= control target key end

     0   :  { %s3013_s0 = inlined_call_operand.hbm [shape: f32[2,16,16,128], index: 0, kind: input, shape index: {}]   ;;  %s3014_s1 = inlined_call_operand.hbm [shape: f32[2,2,2,16,128], index: 1, kind: input, shape index: {}]   ;;  %s3015_s2 = inlined_call_operand.hbm [shape: f32[3,3,128], index: 2, kind: input, shape index: {}]   ;;  %s3016_s3 = inlined_call_operand.vmem [shape: f32[1,1,128], index: 3, kind: input, shape index: {}]   ;;  %s3017_s4 = inlined_call_operand.vmem [shape: f32[1,1,128], index: 4, kind: input, shape index: {}]   ;;  %s3018_s5 = inlined_call_operand.hbm [shape: bf16[128,128], index: 5, kind: input, shape index: {}]   ;;  %s3019_s6 = inlined_call_operand.vmem [shape: f32[2,14,14,128], index: 6, kind: output, shape index: {}]  }
   0x1   :  { %3029 = sst [smem:[#allocation18_spill]] %s3015_s2 }
   0x2   :  { %3030 = sst [smem:[#allocation19_spill]] %s3018_s5 }
   0x3   :  { %3031 = sst [smem:[#allocation20_spill]] %s3019_s6 }
   0x4   :  { %11 = vsyncpa [#allocation4], 0 }
   0x5   :  { %13 = vsyncpa [#allocation4 + $0x1], 0 }
   0x6   :  { %14 = vsyncpa [#allocation6], 0 }
   0x7   :  { %16 = vsyncpa [#allocation6 + $0x1], 0 }
   0x8   :  { %17 = vsyncpa [#allocation9], 0  ;;  %s2208_s21 = smov 0   ;;  %s2210_s22 = smov 0  }
   0x9   :  { %s2212_s23 = smov 0   ;;  %s2214_s24 = smov 0  }
   0xa   :  { %s2216_s25 = smov 0   ;;  %s2218_s26 = smov 0  }
   0xb   :  { %s2220_s27 = smov 0   ;;  %s2222_s28 = smov 0  }
   0xc LB: > { %3032 = sst [smem:[#allocation14_spill]] %s2147_s25  ;;  %s3020_s29 = sadd.s32 4294967295, %s2159_s28   ;;  %s2159_s28 = sphi %s2222_s28, %s23_s28   ;;  %s2155_s27 = sphi %s2220_s27, %s3060_s27   ;;  %s2151_s26 = sphi %s2218_s26, %s3059_s26   ;;  %s2147_s25 = sphi %s2216_s25, %s3058_s25   ;;  %s2143_s24 = sphi %s2214_s24, %s3057_s24   ;;  %s2139_s23 = sphi %s2212_s23, %s3056_s23   ;;  %s2135_s22 = sphi %s2210_s22, %s3055_s22   ;;  %s2131_s21 = sphi %s2208_s21, %s3054_s21  }
   0xd   : > { %s32_s30 = sadd.s32 1, %s2151_s26  ;;  %s35_s7 = sadd.s32 1, %s2155_s27 }
   0xe   : > { %p33_p0 = scmp.ge.s32.totalorder %s32_s30, 2  ;;  %s44_s8 = sadd.s32 1, %s2139_s23 }
   0xf   : > { %p51_p1 = scmp.ne.s32.totalorder %s2139_s23, %s2135_s22  ;;  %p52_p2 = scmp.eq.s32.totalorder %s2159_s28, 0 }
  0x10   : > { %s3062_s30 = smov (%p33_p0, %s32_s30), 0  ;;  %s3064_s7 = smov (!%p33_p0, %s35_s7), %s2155_s27 }
  0x11   : > { %3033 = sst [smem:[#allocation15_spill]] %s3062_s30  ;;  %s40_s9 = ssub.s32 %s2151_s26, %s3062_s30 }
  0x12   : > { %p37_p3 = scmp.ge.s32.totalorder %s3064_s7, 2  ;;  %p57_p4 = scmp.ne.s32.totalorder %s2135_s22, %s2131_s21 }
  0x13   : > { %p2259_p5 = por %p52_p2, %p51_p1  ;;  %p2265_p6 = scmp.eq.s32.totalorder %s3020_s29, 0 }
  0x14   : > { %s3066_s7 = smov (%p37_p3, %s3064_s7), 0  ;;  %p1603_p8 = scmp.ge.s32.totalorder %s2159_s28, 1 }
  0x15   : > { %s3034_s10 = scalar_select %p2259_p5, 1, 0 }
  0x16   : > { %s3035_s11 = scalar_select %p2265_p6, 1, 0 }
  0x17   : > { %3036 = sst [smem:[#allocation16_spill]] %s3066_s7  ;;  %p2273_p7 = por %p2265_p6, %p57_p4 }
  0x18   : > { %s39_s13 = ssub.s32 %s2155_s27, %s3066_s7  ;;  %p208_p9 = scmp.lt.s32.totalorder %s2159_s28, 5 }
  0x19   : > { %s3037_s12 = scalar_select %p2273_p7, 1, 0 }
  0x1a   : > { %s41_s14 = sor.u32 %s40_s9, %s39_s13  ;;  %p2281_p11 = pnand %p1603_p8, %p208_p9 }
  0x1b   : > { %p42_p10 = scmp.eq.s32.totalorder %s41_s14, 0  ;;  %s2161_s17 = smov [#allocation7]  }
  0x1c   : > { %s3038_s15 = scalar_select %p2281_p11, 1, 0 }
  0x1d   : > { %s2286_s16 = scalar_select %p42_p10, %s2139_s23, %s44_s8  }
  0x1e   : > { %p1871_p12 = pneg %p2281_p11  ;;  %s220_s18 = sshll.u32 %s2161_s17, 4  ;;  %s221_s18 = int_to_ptr.vmem [resolvable:$true] %s220_s18 }
  0x1f   : > { %3039 = sst [smem:[#allocation17_spill]] %s2286_s16  ;;  %s2162_s20 = smov [#allocation8]  }
  0x20   : > { %p2292_p13 = pnand %p1871_p12, %p2265_p6  ;;  %s239_s21 = sshll.u32 %s2162_s20, 4  ;;  %s2296_s21 = int_to_ptr.vmem [resolvable:$true] %s239_s21 }
  0x21   : > { %s3041_s2 = sld [smem:[#allocation18_spill]] }
  0x22   : > { %p1969_p1 = pneg %p2292_p13 }
  0x27   : > { %s1967_s8 = scalar_lea.hbm %s3041_s2, 192 }
  0x28   : > { %p1968_p0 = scmp.ne.s32.totalorder %s3041_s2, %s1967_s8  ;;  %p1974_p4 = scmp.lt.u32.totalorder %s1967_s8, %s3041_s2 }
  0x2a   : > { %p1970_p2 = pnand %p1969_p1, %p1968_p0 }
  0x2c   : > { %p1971_p3 = pneg %p1970_p2 }
  0x2e   : > { %p1976_p8 = pnand %p1974_p4, %p1971_p3 }
  0x30   : > { %1979 = shalt.err (!%p1976_p8)
}
  0x31   : > { %s1980_s20 = scalar_lea.vmem %s221_s18, 192  ;;  %p1988_p6 = scmp.lt.s32.totalorder %s221_s18, %s221_s18 }
  0x32   : > { %p1981_p9 = scmp.ne.s32.totalorder %s221_s18, %s1980_s20  ;;  %p1989_p7 = scmp.lt.s32.totalorder %s1980_s20, %s1980_s20 }
  0x34   : > { %p1983_p10 = pnand %p1981_p9, %p1969_p1  ;;  %p1990_p11 = por %p1989_p7, %p1988_p6 }
  0x36   : > { %p1984_p12 = pneg %p1983_p10 }
  0x38   : > { %p1991_p5 = pnand %p1990_p11, %p1984_p12 }
  0x3a   : > { %1994 = shalt.err (!%p1991_p5)
}
  0x3b   : > { %s2163_s29 = smov 64   ;;  %s2164_s9 = smov 4  }
  0x3c   : > { %1874 = dma.hbm_to_vmem [thread:$0]  (!%p2292_p13), %s3041_s2, 192, %s221_s18, [#allocation6], %s2163_s29, %s2163_s29, %s2164_s9  }
  0x3d   : > { %s3042_s5 = sld [smem:[#allocation19_spill]] }
  0x43   : > { %s1995_s17 = scalar_lea.hbm %s3042_s5, 1024 }
  0x44   : > { %p1996_p0 = scmp.ne.s32.totalorder %s3042_s5, %s1995_s17  ;;  %p2002_p7 = scmp.lt.u32.totalorder %s1995_s17, %s3042_s5 }
  0x46   : > { %p1998_p5 = pnand %p1996_p0, %p1969_p1 }
  0x48   : > { %p1999_p6 = pneg %p1998_p5 }
  0x4a   : > { %p2004_p11 = pnand %p2002_p7, %p1999_p6 }
  0x4c   : > { %2007 = shalt.err (!%p2004_p11)
}
  0x4d   : > { %s2008_s18 = scalar_lea.vmem %s2296_s21, 1024  ;;  %p2016_p8 = scmp.lt.s32.totalorder %s2296_s21, %s2296_s21 }
  0x4e   : > { %p2009_p2 = scmp.ne.s32.totalorder %s2296_s21, %s2008_s18  ;;  %p2017_p9 = scmp.lt.s32.totalorder %s2008_s18, %s2008_s18 }
  0x50   : > { %p2011_p3 = pnand %p2009_p2, %p1969_p1  ;;  %p2018_p10 = por %p2017_p9, %p2016_p8 }
  0x52   : > { %p2012_p4 = pneg %p2011_p3 }
  0x54   : > { %p2019_p12 = pnand %p2018_p10, %p2012_p4 }
  0x56   : > { %2022 = shalt.err (!%p2019_p12)
}
  0x57   : > { %1877 = dma.hbm_to_vmem [thread:$0]  (!%p2292_p13), %s3042_s5, 1024, %s2296_s21, [#allocation9], %s2163_s29, %s2163_s29, %s2164_s9  }
  0x58   : > { %p1606_p0 = scmp.ge.s32.totalorder %s2159_s28, 4 }
  0x59   : > { %p3043_p5 = scmp.ne.s32.totalorder (!%p1606_p0), %s3034_s10, 0 }
  0x5a   : > { %249 = sbr.rel (%p1606_p0) target bundleno = 155 (0x9b), region = 32 }
  0x61   : > { %252 = sbr.rel (!%p3043_p5) target bundleno = 126 (0x7e), region = 36  ;;  %s253_s16 = sand.u32 (%p3043_p5), 1, %s2139_s23  }
  0x62   : > { %s1857_s7 = smul.u32 (%p3043_p5), 112, %s253_s16  ;;  %s2349_s13 = scalar_lea.sflag (%p3043_p5), [#allocation4], %s253_s16 }
  0x63   : > { %s1651_s19 = smul.u32 (%p3043_p5), 14, %s2151_s26  ;;  %s1611_s14 = sshll.u32 (%p3043_p5), %s2155_s27, 5 }
  0x64   : > { %s257_s8 = scalar_lea.vmem (%p3043_p5), [#allocation3], %s1857_s7  ;;  %s2027_s5 = scalar_lea.hbm (%p3043_p5), %s3013_s0, 8192 }
  0x65   : > { %s275_s17 = sshll.u32 (%p3043_p5), %s257_s8, 4  ;;  %s270_s20 = sadd.s32 (%p3043_p5), %s1651_s19, %s1611_s14  ;;  %s2353_s17 = int_to_ptr.vmem [resolvable:$true] %s275_s17 }
  0x66   : > { %s1612_s21 = sshll.u32 (%p3043_p5), %s270_s20, 7 }
  0x67   : > { %s272_s18 = scalar_lea.hbm (%p3043_p5), %s3013_s0, %s1612_s21 }
  0x68   : > { %s2023_s6 = scalar_lea.hbm %s272_s18, 1792  ;;  %p2028_p1 = scmp.lt.u32.totalorder %s272_s18, %s3013_s0 }
  0x69   : > { %p2024_p13 = scmp.ne.s32.totalorder %s272_s18, %s2023_s6  ;;  %p2029_p6 = scmp.lt.u32.totalorder %s2027_s5, %s2023_s6 }
  0x6a   : > { %p2031_p11 = scmp.lt.u32.totalorder %s2023_s6, %s272_s18 }
  0x6b   : > { %p2030_p7 = por %p2029_p6, %p2028_p1 }
  0x6d   : > { %p2032_p2 = por %p2031_p11, %p2030_p7 }
  0x6f   : > { %p2033_p3 = pnand %p2032_p2, %p2024_p13 }
  0x71   : > { %2036 = shalt.err (!%p2033_p3)
}
  0x72   : > { %s2037_s7 = scalar_lea.vmem %s2353_s17, 1792  ;;  %s2165_s8 = smov [#allocation3]  }
  0x73   : > { %p2038_p4 = scmp.ne.s32.totalorder %s2353_s17, %s2037_s7  ;;  %s2041_s19 = sshll.u32 %s2165_s8, 4  ;;  %s2042_s19 = int_to_ptr.vmem [resolvable:$false] %s2041_s19 }
  0x74   : > { %s2043_s2 = scalar_lea.vmem %s2042_s19, 3584  ;;  %p2044_p8 = scmp.lt.s32.totalorder %s2353_s17, %s2042_s19 }
  0x75   : > { %p2045_p9 = scmp.lt.s32.totalorder %s2043_s2, %s2037_s7 }
  0x77   : > { %p2046_p10 = por %p2045_p9, %p2044_p8 }
  0x79   : > { %p2047_p12 = pnand %p2046_p10, %p2038_p4 }
  0x7b   : > { %2050 = shalt.err (!%p2047_p12)
}
  0x7c   : > { %s2166_s5 = smov 128   ;;  %s2167_s25 = smov 8  }
  0x7d   : > { %281 = dma.hbm_to_vmem [thread:$0]  %s272_s18, 1792, %s2353_s17, %s2349_s13, %s2166_s5, %s2166_s5, %s2167_s25  }
  0x7e PF: > { %s285_s14 = sand.u32 1, %s2159_s28   ;;  %s287_s20 = sand.u32 1, %s2139_s23  }
  0x7f   : > { %s1616_s21 = sshll.u32 %s287_s20, 5  ;;  %s1617_s29 = sshll.u32 %s2151_s26, 2 }
  0x80   : > { %s1618_s9 = sshll.u32 %s2155_s27, 3  ;;  %s289_s6 = scalar_lea.vmem [#allocation5], %s1616_s21 }
  0x81   : > { %s298_s30 = sshll.u32 %s289_s6, 4  ;;  %s295_s16 = sadd.s32 %s1618_s9, %s1617_s29  ;;  %s2373_s30 = int_to_ptr.vmem [resolvable:$true] %s298_s30 }
  0x82   : > { %s1619_s7 = sshll.u32 %s295_s16, 7  ;;  %s2380_s17 = scalar_lea.sflag [#allocation6], %s285_s14 }
  0x83   : > { %s2378_s13 = scalar_lea.hbm %s3014_s1, %s1619_s7  ;;  %p3044_p5 = scmp.ne.s32.totalorder %s3034_s10, 0 }
  0x84   : > { %s2051_s18 = scalar_lea.hbm %s2378_s13, 512  ;;  %s2055_s25 = scalar_lea.hbm %s3014_s1, 2048 }
  0x85   : > { %p2052_p0 = scmp.ne.s32.totalorder %s2378_s13, %s2051_s18  ;;  %p2056_p6 = scmp.lt.u32.totalorder %s2378_s13, %s3014_s1 }
  0x86   : > { %p2057_p7 = scmp.lt.u32.totalorder %s2055_s25, %s2051_s18  ;;  %p2059_p2 = scmp.lt.u32.totalorder %s2051_s18, %s2378_s13 }
  0x87   : > { %p2053_p13 = pnand %p2052_p0, %p3044_p5 }
  0x88   : > { %p2058_p11 = por %p2057_p7, %p2056_p6 }
  0x89   : > { %p2054_p1 = pneg %p2053_p13 }
  0x8a   : > { %p2060_p3 = por %p2059_p2, %p2058_p11 }
  0x8c   : > { %p2061_p4 = pnand %p2060_p3, %p2054_p1 }
  0x8e   : > { %2064 = shalt.err (!%p2061_p4)
}
  0x8f   : > { %s2065_s14 = scalar_lea.vmem %s2373_s30, 512  ;;  %s2168_s29 = smov [#allocation5]  }
  0x90   : > { %p2066_p8 = scmp.ne.s32.totalorder %s2373_s30, %s2065_s14  ;;  %s2069_s9 = sshll.u32 %s2168_s29, 4  ;;  %s2070_s9 = int_to_ptr.vmem [resolvable:$false] %s2069_s9 }
  0x91   : > { %s2071_s6 = scalar_lea.vmem %s2070_s9, 1024  ;;  %p2072_p12 = scmp.lt.s32.totalorder %s2373_s30, %s2070_s9 }
  0x92   : > { %p2067_p9 = pnand %p2066_p8, %p3044_p5  ;;  %p2073_p0 = scmp.lt.s32.totalorder %s2071_s6, %s2065_s14 }
  0x94   : > { %p2068_p10 = pneg %p2067_p9  ;;  %p2074_p13 = por %p2073_p0, %p2072_p12 }
  0x96   : > { %p2075_p6 = pnand %p2074_p13, %p2068_p10 }
  0x98   : > { %2078 = shalt.err (!%p2075_p6)
}
  0x99   : > { %s2169_s16 = smov 128   ;;  %s2170_s7 = smov 8  }
  0x9a   : > { %1864 = dma.hbm_to_vmem [thread:$0]  (%p3044_p5), %s2378_s13, 512, %s2373_s30, %s2380_s17, %s2169_s16, %s2169_s16, %s2170_s7  }
  0x9b PF: > { %p3045_p1 = scmp.ne.s32.totalorder %s3038_s15, 0 }
  0x9c   : > { %s312_s8 = sand.u32 (!%p3045_p1), 1, %s2135_s22   ;;  %p3046_p7 = scmp.ne.s32.totalorder (!%p3045_p1), %s3037_s12, 0 }
  0x9d   : > { %310 = sbr.rel (%p3045_p1) target bundleno = 520 (0x208), region = 44  ;;  %s313_s18 = scalar_lea.sflag (!%p3045_p1), [#allocation4], %s312_s8 }
  0x9e   : > { %s1858_s19 = smul.u32 (!%p3045_p1), 112, %s312_s8 }
  0xa0   : > { %s2407_s2 = scalar_lea.vmem (!%p3045_p1), [#allocation3], %s1858_s19 }
  0xa4   : > { %2112 = dma.done.wait (%p3046_p7), %s313_s18, 1792  }
  0xa5   : > { %2114 = vsyncadd (%p3046_p7), %s313_s18, 4294965504  ;;  %s3047_s5 = sadd.s32 4294967295, %s2159_s28   ;;  %s1621_s30 = sshll.u32 %s312_s8, 5 }
  0xa6   : > { %s321_s10 = sand.u32 1, %s3047_s5   ;;  %s2415_s15 = scalar_lea.vmem [#allocation5], %s1621_s30 }
  0xa7   : > { %s322_s13 = scalar_lea.sflag [#allocation6], %s321_s10 }
  0xa8   : > { %2116 = dma.done.wait (%p3046_p7), %s322_s13, 512  }
  0xa9   : > { %2118 = vsyncadd (%p3046_p7), %s322_s13, 4294966784  ;;  %p3048_p5 = scmp.ne.s32.totalorder %s3035_s11, 0 }
  0xab   : > { %2120 = dma.done.wait (%p3048_p5), [#allocation6], 192  }
  0xac   : > { %2122 = vsyncadd (%p3048_p5), [#allocation6], 4294967104 }
  0xad   : > { %2124 = dma.done.wait (%p3048_p5), [#allocation9], 1024  }
  0xae   : > { %2126 = vsyncadd (%p3048_p5), [#allocation9], 4294966272  ;;  %v2171_v0 = vmov 0.0   ;;  %vm2172_vm0 = vmmov 0   ;;  %v448_v1 = vlaneseq  ;;  %v2435_v2 = vld [vmem:[#allocation8] sm:$0xff]   ;;  %v2438_v3 = vld [vmem:[#allocation8 + $0x8] sm:$0xff]  }
  0xaf   : > { %1717 = vmatprep.subr.bf16.mxu0 %v2171_v0  ;;  %1737 = vmatprep.subr.bf16.mxu1 %v2171_v0  ;;  %v2444_v5 = vld [vmem:[#allocation8 + $0x10] sm:$0xff]   ;;  %v2449_v8 = vld [vmem:[#allocation8 + $0x18] sm:$0xff]   ;;  %vm576_vm1 = vcmask 1046528   ;;  %vm820_vm2 = vcmask 1045504   ;;  %v2496_v31 = vld [vmem:[#allocation8 + $0x20] sm:$0xff]   ;;  %s3049_s20 = sld [smem:[#allocation14_spill]] }
  0xb0   : > { %1733 = vmatprep.mubr.msk.bf16.mxu0 %vm2172_vm0, %v2171_v0  ;;  %1753 = vmatprep.mubr.msk.bf16.mxu1 %vm2172_vm0, %v2171_v0  ;;  %v449_v4 = vshrl.u32 %v448_v1, 7  ;;  %v390_v9 = vld [vmem:[%s2407_s2] sm:$0xff]  ;;  %v391_v11 = vld [vmem:[%s2407_s2 + $0x8] sm:$0xff]  ;;  %v2456_v12 = vld [vmem:[%s2407_s2 + $0x10] sm:$0xff]  ;;  %s378_s21 = smul.u32 7, %s2143_s24  ;;  %s3050_s8 = sld [smem:[#allocation20_spill]] }
  0xb1   : > { %1718 = vmatpush3.bf16.msra.mxu0 %v2435_v2  ;;  %1738 = vmatpush3.bf16.msra.mxu1 %v2435_v2  ;;  %v2459_v13 = vld [vmem:[%s2407_s2 + $0x18] sm:$0xff]  ;;  %v445_v14 = vld [vmem:[#allocation7] sm:$0x7]  ;;  %v446_v15 = vld [vmem:[#allocation7 + $0x4] sm:$0x7] }
  0xb2   : > { %1719 = vmatprep.subr.bf16.mxu0 %v2171_v0  ;;  %1739 = vmatprep.subr.bf16.mxu1 %v2171_v0  ;;  %v450_v6 = vsub.s32 0, %v449_v4  ;;  %v546_v7 = vsub.s32 1, %v449_v4  ;;  %v2452_v10 = vsub.s32 2, %v449_v4  ;;  %v447_v16 = vld [vmem:[#allocation7 + $0x8] sm:$0x7]  ;;  %v2465_v17 = vld [vmem:[%s2407_s2 + $0x20] sm:$0xff] }
  0xb3   : > { %v2468_v18 = vld [vmem:[%s2407_s2 + $0x28] sm:$0xff]  ;;  %p381_p2 = scmp.lt.s32.totalorder %s378_s21, 13 }
  0xb4   : > { %v2470_v19 = vrot.slane %v445_v14, %v450_v6  ;;  %v2472_v20 = vrot.slane %v446_v15, %v450_v6  ;;  %v2474_v21 = vrot.slane %v447_v16, %v450_v6  ;;  %v2476_v22 = vrot.slane %v445_v14, %v546_v7  ;;  %v2516_v48 = vld [vmem:[#allocation8 + $0x28] sm:$0xff]   ;;  %v2534_v4 = vld [vmem:[#allocation8 + $0x30] sm:$0xff]  }
  0xb5   : > { %1720 = vmatpush3.bf16.msra.mxu0 %v2438_v3  ;;  %1740 = vmatpush3.bf16.msra.mxu1 %v2438_v3  ;;  %v2478_v23 = vrot.slane %v446_v15, %v546_v7  ;;  %v2480_v24 = vrot.slane %v447_v16, %v546_v7  ;;  %v2483_v25 = vrot.slane %v445_v14, %v2452_v10  ;;  %p379_p11 = scmp.lt.s32.totalorder %s3049_s20, 1  ;;  %s3070_s21 = smov (!%p381_p2, %s378_s21), 13 }
  0xb6   : > { %1721 = vmatprep.subr.bf16.mxu0 %v2171_v0  ;;  %1741 = vmatprep.subr.bf16.mxu1 %v2171_v0  ;;  %v2486_v26 = vrot.slane %v446_v15, %v2452_v10  ;;  %v452_v27 = vmul.f32 %v2470_v19, %v390_v9  ;;  %v453_v28 = vmul.f32 %v2470_v19, %v391_v11  ;;  %s1624_s29 = sshll.u32 %s3070_s21, 1 }
  0xb7   : > { %v484_v29 = vmul.f32 %v2472_v20, %v2456_v12  ;;  %v485_v30 = vmul.f32 %v2472_v20, %v2459_v13  ;;  %v516_v32 = vmul.f32 %v2474_v21, %v2465_v17  ;;  %v517_v33 = vmul.f32 %v2474_v21, %v2468_v18  ;;  %s3068_s20 = smov (!%p379_p11, %s3049_s20), 1 }
  0xb8   : > { %v548_v34 = vmul.f32 %v2476_v22, %v390_v9  ;;  %v549_v35 = vmul.f32 %v2476_v22, %v391_v11  ;;  %v630_v38 = vmul.f32 %v2478_v23, %v2456_v12  ;;  %v631_v39 = vmul.f32 %v2478_v23, %v2459_v13  ;;  %s1859_s14 = smul.u32 28, %s3068_s20 }
  0xb9   : > { %1722 = vmatpush3.bf16.msra.mxu0 %v2444_v5  ;;  %1742 = vmatpush3.bf16.msra.mxu1 %v2444_v5  ;;  %v498_v36 = vadd.f32 %v484_v29, %v452_v27  ;;  %v499_v37 = vadd.f32 %v485_v30, %v453_v28  ;;  %v711_v42 = vmul.f32 %v2480_v24, %v2465_v17  ;;  %v2548_v28 = vld [vmem:[%s2407_s2 + $0x38] sm:$0xff] }
  0xba   : > { %1723 = vmatprep.subr.bf16.mxu0 %v2171_v0  ;;  %1743 = vmatprep.subr.bf16.mxu1 %v2171_v0  ;;  %v577_v40 = vrot.slane %v548_v34, 1  ;;  %v578_v41 = vrot.slane %v549_v35, 1  ;;  %v712_v43 = vmul.f32 %v2480_v24, %v2468_v18  ;;  %v658_v46 = vrot.slane %v630_v38, 1  ;;  %v2562_v38 = vld [vmem:[#allocation8 + $0x38] sm:$0xff]   ;;  %s385_s9 = sadd.s32 %s1859_s14, %s1624_s29 }
  0xbb   : > { %v530_v44 = vadd.f32 %v516_v32, %v498_v36  ;;  %v531_v45 = vadd.f32 %v517_v33, %v499_v37  ;;  %v659_v47 = vrot.slane %v631_v39, 1  ;;  %v739_v50 = vrot.slane %v711_v42, 1  ;;  %s1625_s6 = sshll.u32 %s385_s9, 3 }
  0xbc   : > { %v579_v49 = vsel %vm576_vm1, %v577_v40, %v578_v41  ;;  %v740_v51 = vrot.slane %v712_v43, 1  ;;  %v792_v52 = vmul.f32 %v2483_v25, %v390_v9  ;;  %v793_v56 = vmul.f32 %v2483_v25, %v391_v11  ;;  %v2537_v9 = vld [vmem:[%s2407_s2 + $0x30] sm:$0xff]  ;;  %s2973_s19 = scalar_lea.vmem %s3050_s8, %s1625_s6 }
  0xbd   : > { %1724 = vmatpush3.bf16.msra.mxu0 %v2449_v8  ;;  %1744 = vmatpush3.bf16.msra.mxu1 %v2449_v8  ;;  %v612_v53 = vadd.f32 %v579_v49, %v530_v44  ;;  %v613_v54 = vadd.f32 %v578_v41, %v531_v45  ;;  %v660_v55 = vsel %vm576_vm1, %v658_v46, %v659_v47  ;;  %v2575_v49 = vld [vmem:[%s3016_s3] ss:$0 sm:$0xff] }
  0xbe   : > { %1725 = vmatprep.subr.bf16.mxu0 %v2171_v0  ;;  %1745 = vmatprep.subr.bf16.mxu1 %v2171_v0  ;;  %v741_v57 = vsel %vm576_vm1, %v739_v50, %v740_v51  ;;  %v821_v58 = vrot.slane %v792_v52, 2  ;;  %v874_v59 = vmul.f32 %v2486_v26, %v2456_v12  ;;  %v875_v60 = vmul.f32 %v2486_v26, %v2459_v13 }
  0xbf   : > { %v693_v61 = vadd.f32 %v660_v55, %v612_v53  ;;  %v694_v62 = vadd.f32 %v659_v47, %v613_v54  ;;  %v822_v63 = vrot.slane %v793_v56, 2  ;;  %v2530_v1 = vrot.slane %v447_v16, %v2452_v10 }
  0xc0   : > { %v902_v6 = vrot.slane %v874_v59, 2  ;;  %v903_v7 = vrot.slane %v875_v60, 2  ;;  %v454_v11 = vmul.f32 %v2470_v19, %v2456_v12  ;;  %v455_v14 = vmul.f32 %v2470_v19, %v2459_v13 }
  0xc1   : > { %1726 = vmatpush3.bf16.msra.mxu0 %v2496_v31  ;;  %1746 = vmatpush3.bf16.msra.mxu1 %v2496_v31  ;;  %v774_v10 = vadd.f32 %v741_v57, %v693_v61  ;;  %v775_v15 = vadd.f32 %v740_v51, %v694_v62  ;;  %v823_v16 = vsel %vm820_vm2, %v821_v58, %v822_v63  ;;  %v2585_v57 = vld [vmem:[%s3017_s4] ss:$0 sm:$0xff] }
  0xc2   : > { %1727 = vmatprep.subr.bf16.mxu0 %v2171_v0  ;;  %1747 = vmatprep.subr.bf16.mxu1 %v2171_v0  ;;  %v955_v27 = vmul.f32 %v2530_v1, %v2465_v17  ;;  %v904_v29 = vsel %vm820_vm2, %v902_v6, %v903_v7  ;;  %v956_v30 = vmul.f32 %v2530_v1, %v2468_v18 }
  0xc3   : > { %v486_v32 = vmul.f32 %v2472_v20, %v2465_v17  ;;  %v487_v33 = vmul.f32 %v2472_v20, %v2468_v18  ;;  %v856_v34 = vadd.f32 %v823_v16, %v774_v10  ;;  %v857_v35 = vadd.f32 %v822_v63, %v775_v15 }
  0xc4   : > { %v983_v36 = vrot.slane %v955_v27, 2  ;;  %v518_v37 = vmul.f32 %v2474_v21, %v2537_v9  ;;  %v984_v39 = vrot.slane %v956_v30, 2  ;;  %v519_v42 = vmul.f32 %v2474_v21, %v2548_v28 }
  0xc5   : > { %1728 = vmatpush3.bf16.msra.mxu0 %v2516_v48  ;;  %1748 = vmatpush3.bf16.msra.mxu1 %v2516_v48  ;;  %v500_v40 = vadd.f32 %v486_v32, %v454_v11  ;;  %v501_v41 = vadd.f32 %v487_v33, %v455_v14  ;;  %v937_v43 = vadd.f32 %v904_v29, %v856_v34 }
  0xc6   : > { %1729 = vmatprep.subr.bf16.mxu0 %v2171_v0  ;;  %1749 = vmatprep.subr.bf16.mxu1 %v2171_v0  ;;  %v938_v44 = vadd.f32 %v903_v7, %v857_v35  ;;  %v550_v45 = vmul.f32 %v2476_v22, %v2456_v12  ;;  %v551_v46 = vmul.f32 %v2476_v22, %v2459_v13 }
  0xc7   : > { %v985_v47 = vsel %vm820_vm2, %v983_v36, %v984_v39  ;;  %v532_v50 = vadd.f32 %v518_v37, %v500_v40  ;;  %v533_v51 = vadd.f32 %v519_v42, %v501_v41  ;;  %v632_v52 = vmul.f32 %v2478_v23, %v2465_v17 }
  0xc8   : > { %v1018_v53 = vadd.f32 %v985_v47, %v937_v43  ;;  %v1019_v54 = vadd.f32 %v984_v39, %v938_v44  ;;  %v580_v55 = vrot.slane %v550_v45, 1  ;;  %v581_v56 = vrot.slane %v551_v46, 1  ;;  %v2617_v46 = vld [vmem:[%s2407_s2 + $0x40] sm:$0xff]  ;;  %v2620_v47 = vld [vmem:[%s2407_s2 + $0x48] sm:$0xff] }
  0xc9   : > { %1730 = vmatpush3.bf16.msra.mxu0 %v2534_v4  ;;  %1750 = vmatpush3.bf16.msra.mxu1 %v2534_v4  ;;  %v633_v58 = vmul.f32 %v2478_v23, %v2468_v18  ;;  %v661_v59 = vrot.slane %v632_v52, 1  ;;  %v713_v60 = vmul.f32 %v2480_v24, %v2537_v9  ;;  %v714_v61 = vmul.f32 %v2480_v24, %v2548_v28 }
  0xca   : > { %1731 = vmatprep.subr.bf16.mxu0 %v2171_v0  ;;  %1751 = vmatprep.subr.bf16.mxu1 %v2171_v0  ;;  %v1039_v62 = vmul.f32 %v2575_v49, %v1018_v53  ;;  %v1040_v63 = vmul.f32 %v2575_v49, %v1019_v54  ;;  %v582_v6 = vsel %vm576_vm1, %v580_v55, %v581_v56 }
  0xcb   : > { %v615_v7 = vadd.f32 %v581_v56, %v533_v51  ;;  %v614_v11 = vadd.f32 %v582_v6, %v532_v50  ;;  %v662_v14 = vrot.slane %v633_v58, 1  ;;  %v742_v10 = vrot.slane %v713_v60, 1 }
  0xcc   : > { %v743_v15 = vrot.slane %v714_v61, 1  ;;  %v1060_v16 = vadd.f32 %v2585_v57, %v1039_v62  ;;  %v1061_v27 = vadd.f32 %v2585_v57, %v1040_v63  ;;  %v794_v29 = vmul.f32 %v2483_v25, %v2456_v12 }
  0xcd   : > { %1732 = vmatpush3.bf16.msra.mxu0 %v2562_v38  ;;  %1752 = vmatpush3.bf16.msra.mxu1 %v2562_v38  ;;  %v795_v30 = vmul.f32 %v2483_v25, %v2459_v13  ;;  %v663_v32 = vsel %vm576_vm1, %v661_v59, %v662_v14  ;;  %v696_v33 = vadd.f32 %v662_v14, %v615_v7 }
  0xce   : > { %1757 = vmatprep.subr.bf16.mxu0 %v2171_v0  ;;  %1777 = vmatprep.subr.bf16.mxu1 %v2171_v0  ;;  %v744_v34 = vsel %vm576_vm1, %v742_v10, %v743_v15  ;;  %v876_v35 = vmul.f32 %v2486_v26, %v2465_v17  ;;  %v1074_v36 = vpack.c.bf16 %v1061_v27, %v1060_v16  ;;  %v824_v39 = vrot.slane %v794_v29, 2 }
  0xcf   : > { %v695_v37 = vadd.f32 %v663_v32, %v614_v11  ;;  %v825_v40 = vrot.slane %v795_v30, 2  ;;  %v777_v41 = vadd.f32 %v743_v15, %v696_v33  ;;  %v877_v12 = vmul.f32 %v2486_v26, %v2468_v18 }
  0xd0   : > { %v905_v42 = vrot.slane %v876_v35, 2  ;;  %v957_v13 = vmul.f32 %v2530_v1, %v2537_v9  ;;  %1734 = vmatmul.mubr.bf16.vlgmr.msra.gmra.mrb[0].mxu0 %v1074_v36  ;;  %v958_v45 = vmul.f32 %v2530_v1, %v2548_v28  ;;  %v456_v50 = vmul.f32 %v2470_v19, %v2465_v17 }
  0xd1   : > { %v776_v43 = vadd.f32 %v744_v34, %v695_v37  ;;  %v826_v44 = vsel %vm820_vm2, %v824_v39, %v825_v40  ;;  %1758 = vmatpush3.bf16.msra.mxu0 %v2435_v2  ;;  %v859_v51 = vadd.f32 %v825_v40, %v777_v41  ;;  %v906_v52 = vrot.slane %v877_v12, 2  ;;  %1773 = vmatprep.mubr.msk.bf16.mxu0 %vm2172_vm0, %v2171_v0 }
  0xd2   : > { %v986_v53 = vrot.slane %v957_v13, 2  ;;  %v457_v54 = vmul.f32 %v2470_v19, %v2468_v18  ;;  %1759 = vmatprep.subr.bf16.mxu0 %v2171_v0  ;;  %v987_v56 = vrot.slane %v958_v45, 2  ;;  %v488_v58 = vmul.f32 %v2472_v20, %v2537_v9 }
  0xd3   : > { %v858_v55 = vadd.f32 %v826_v44, %v776_v43  ;;  %v489_v59 = vmul.f32 %v2472_v20, %v2548_v28  ;;  %v907_v60 = vsel %vm820_vm2, %v905_v42, %v906_v52  ;;  %v940_v61 = vadd.f32 %v906_v52, %v859_v51 }
  0xd4   : > { %v520_v62 = vmul.f32 %v2474_v21, %v2617_v46  ;;  %v521_v63 = vmul.f32 %v2474_v21, %v2620_v47  ;;  %v988_v7 = vsel %vm820_vm2, %v986_v53, %v987_v56  ;;  %v502_v11 = vadd.f32 %v488_v58, %v456_v50 }
  0xd5   : > { %v939_v6 = vadd.f32 %v907_v60, %v858_v55  ;;  %v503_v14 = vadd.f32 %v489_v59, %v457_v54  ;;  %1760 = vmatpush3.bf16.msra.mxu0 %v2438_v3  ;;  %v1021_v10 = vadd.f32 %v987_v56, %v940_v61  ;;  %v552_v15 = vmul.f32 %v2476_v22, %v2465_v17 }
  0xd6   : > { %v553_v16 = vmul.f32 %v2476_v22, %v2468_v18  ;;  %v634_v27 = vmul.f32 %v2478_v23, %v2537_v9  ;;  %1761 = vmatprep.subr.bf16.mxu0 %v2171_v0  ;;  %v534_v30 = vadd.f32 %v520_v62, %v502_v11  ;;  %v635_v33 = vmul.f32 %v2478_v23, %v2548_v28 }
  0xd7   : > { %v1020_v29 = vadd.f32 %v988_v7, %v939_v6  ;;  %v535_v32 = vadd.f32 %v521_v63, %v503_v14  ;;  %v1042_v34 = vmul.f32 %v2575_v49, %v1021_v10  ;;  %v583_v35 = vrot.slane %v552_v15, 1  ;;  %v2678_v10 = vld [vmem:[%s2407_s2 + $0x50] sm:$0xff] }
  0xd8   : > { %v584_v36 = vrot.slane %v553_v16, 1  ;;  %v664_v37 = vrot.slane %v634_v27, 1  ;;  %v665_v40 = vrot.slane %v635_v33, 1  ;;  %v715_v41 = vmul.f32 %v2480_v24, %v2617_v46 }
  0xd9   : > { %v1041_v39 = vmul.f32 %v2575_v49, %v1020_v29  ;;  %v716_v12 = vmul.f32 %v2480_v24, %v2620_v47  ;;  %1762 = vmatpush3.bf16.msra.mxu0 %v2444_v5  ;;  %v1063_v42 = vadd.f32 %v2585_v57, %v1042_v34  ;;  %v796_v44 = vmul.f32 %v2483_v25, %v2465_v17  ;;  %v2685_v29 = vld [vmem:[%s2407_s2 + $0x58] sm:$0xff] }
  0xda   : > { %v585_v13 = vsel %vm576_vm1, %v583_v35, %v584_v36  ;;  %v617_v43 = vadd.f32 %v584_v36, %v535_v32  ;;  %1763 = vmatprep.subr.bf16.mxu0 %v2171_v0  ;;  %v666_v51 = vsel %vm576_vm1, %v664_v37, %v665_v40  ;;  %v745_v52 = vrot.slane %v715_v41, 1 }
  0xdb   : > { %v1062_v45 = vadd.f32 %v2585_v57, %v1041_v39  ;;  %v616_v50 = vadd.f32 %v585_v13, %v534_v30  ;;  %v746_v54 = vrot.slane %v716_v12, 1  ;;  %v797_v55 = vmul.f32 %v2483_v25, %v2468_v18 }
  0xdc   : > { %v698_v53 = vadd.f32 %v665_v40, %v617_v43  ;;  %v827_v56 = vrot.slane %v796_v44, 2  ;;  %v878_v17 = vmul.f32 %v2486_v26, %v2537_v9  ;;  %v879_v60 = vmul.f32 %v2486_v26, %v2548_v28 }
  0xdd   : > { %v1075_v58 = vpack.c.bf16 %v1063_v42, %v1062_v45  ;;  %v697_v59 = vadd.f32 %v666_v51, %v616_v50  ;;  %1764 = vmatpush3.bf16.msra.mxu0 %v2449_v8  ;;  %v747_v61 = vsel %vm576_vm1, %v745_v52, %v746_v54  ;;  %v828_v63 = vrot.slane %v797_v55, 2 }
  0xde   : > { %v779_v62 = vadd.f32 %v746_v54, %v698_v53  ;;  %v959_v18 = vmul.f32 %v2530_v1, %v2617_v46  ;;  %1765 = vmatprep.subr.bf16.mxu0 %v2171_v0  ;;  %v908_v7 = vrot.slane %v878_v17, 2  ;;  %v909_v11 = vrot.slane %v879_v60, 2 }
  0xdf   : > { %1754 = vmatmul.mubr.bf16.vlgmr.msra.gmra.mrb[0].mxu1 %v1075_v58  ;;  %v778_v6 = vadd.f32 %v747_v61, %v697_v59  ;;  %v960_v14 = vmul.f32 %v2530_v1, %v2620_v47  ;;  %v829_v15 = vsel %vm820_vm2, %v827_v56, %v828_v63  ;;  %v458_v30 = vmul.f32 %v2470_v19, %v2537_v9 }
  0xe0   : > { %1778 = vmatpush3.bf16.msra.mxu1 %v2435_v2  ;;  %v861_v16 = vadd.f32 %v828_v63, %v779_v62  ;;  %v989_v27 = vrot.slane %v959_v18, 2  ;;  %1793 = vmatprep.mubr.msk.bf16.mxu1 %vm2172_vm0, %v2171_v0  ;;  %v910_v33 = vsel %vm820_vm2, %v908_v7, %v909_v11  ;;  %v459_v35 = vmul.f32 %v2470_v19, %v2548_v28 }
  0xe1   : > { %v860_v32 = vadd.f32 %v829_v15, %v778_v6  ;;  %v990_v34 = vrot.slane %v960_v14, 2  ;;  %1779 = vmatprep.subr.bf16.mxu1 %v2171_v0  ;;  %1766 = vmatpush3.bf16.msra.mxu0 %v2496_v31  ;;  %v490_v37 = vmul.f32 %v2472_v20, %v2617_v46  ;;  %v491_v39 = vmul.f32 %v2472_v20, %v2620_v47 }
  0xe2   : > { %v942_v36 = vadd.f32 %v909_v11, %v861_v16  ;;  %v522_v40 = vmul.f32 %v2474_v21, %v2678_v10  ;;  %1767 = vmatprep.subr.bf16.mxu0 %v2171_v0  ;;  %v523_v42 = vmul.f32 %v2474_v21, %v2685_v29  ;;  %v554_v13 = vmul.f32 %v2476_v22, %v2537_v9 }
  0xe3   : > { %v941_v41 = vadd.f32 %v910_v33, %v860_v32  ;;  %v991_v12 = vsel %vm820_vm2, %v989_v27, %v990_v34  ;;  %v504_v44 = vadd.f32 %v490_v37, %v458_v30  ;;  %v505_v45 = vadd.f32 %v491_v39, %v459_v35 }
  0xe4   : > { %v1023_v43 = vadd.f32 %v990_v34, %v942_v36  ;;  %1780 = vmatpush3.bf16.msra.mxu1 %v2438_v3  ;;  %v555_v50 = vmul.f32 %v2476_v22, %v2548_v28  ;;  %v586_v52 = vrot.slane %v554_v13, 1  ;;  %v636_v53 = vmul.f32 %v2478_v23, %v2617_v46 }
  0xe5   : > { %v1022_v51 = vadd.f32 %v991_v12, %v941_v41  ;;  %1781 = vmatprep.subr.bf16.mxu1 %v2171_v0  ;;  %v637_v54 = vmul.f32 %v2478_v23, %v2620_v47  ;;  %1768 = vmatpush3.bf16.msra.mxu0 %v2516_v48  ;;  %v536_v56 = vadd.f32 %v522_v40, %v504_v44 }
  0xe6   : > { %v1044_v55 = vmul.f32 %v2575_v49, %v1023_v43  ;;  %v537_v58 = vadd.f32 %v523_v42, %v505_v45  ;;  %v587_v59 = vrot.slane %v555_v50, 1  ;;  %1769 = vmatprep.subr.bf16.mxu0 %v2171_v0  ;;  %v667_v60 = vrot.slane %v636_v53, 1  ;;  %v2748_v50 = vld [vmem:[%s2407_s2 + $0x60] sm:$0xff] }
  0xe7   : > { %v1043_v17 = vmul.f32 %v2575_v49, %v1022_v51  ;;  %v668_v61 = vrot.slane %v637_v54, 1  ;;  %v717_v62 = vmul.f32 %v2480_v24, %v2678_v10  ;;  %v718_v7 = vmul.f32 %v2480_v24, %v2685_v29  ;;  %v2751_v51 = vld [vmem:[%s2407_s2 + $0x68] sm:$0xff] }
  0xe8   : > { %v1065_v63 = vadd.f32 %v2585_v57, %v1044_v55  ;;  %1782 = vmatpush3.bf16.msra.mxu1 %v2444_v5  ;;  %v588_v18 = vsel %vm576_vm1, %v586_v52, %v587_v59  ;;  %v619_v6 = vadd.f32 %v587_v59, %v537_v58  ;;  %v798_v32 = vmul.f32 %v2483_v25, %v2537_v9 }
  0xe9   : > { %v1064_v11 = vadd.f32 %v2585_v57, %v1043_v17  ;;  %1783 = vmatprep.subr.bf16.mxu1 %v2171_v0  ;;  %v618_v14 = vadd.f32 %v588_v18, %v536_v56  ;;  %v669_v15 = vsel %vm576_vm1, %v667_v60, %v668_v61  ;;  %v748_v16 = vrot.slane %v717_v62, 1  ;;  %1770 = vmatpush3.bf16.msra.mxu0 %v2534_v4 }
  0xea   : > { %v700_v27 = vadd.f32 %v668_v61, %v619_v6  ;;  %v749_v30 = vrot.slane %v718_v7, 1  ;;  %v799_v33 = vmul.f32 %v2483_v25, %v2548_v28  ;;  %1771 = vmatprep.subr.bf16.mxu0 %v2171_v0  ;;  %v880_v36 = vmul.f32 %v2486_v26, %v2617_v46 }
  0xeb   : > { %v1076_v34 = vpack.c.bf16 %v1065_v63, %v1064_v11  ;;  %v699_v35 = vadd.f32 %v669_v15, %v618_v14  ;;  %v881_v37 = vmul.f32 %v2486_v26, %v2620_v47  ;;  %v830_v40 = vrot.slane %v798_v32, 2 }
  0xec   : > { %1784 = vmatpush3.bf16.msra.mxu1 %v2449_v8  ;;  %v750_v39 = vsel %vm576_vm1, %v748_v16, %v749_v30  ;;  %v781_v9 = vadd.f32 %v749_v30, %v700_v27  ;;  %v831_v41 = vrot.slane %v799_v33, 2  ;;  %v911_v12 = vrot.slane %v880_v36, 2 }
  0xed   : > { %1785 = vmatprep.subr.bf16.mxu1 %v2171_v0  ;;  %v780_v28 = vadd.f32 %v750_v39, %v699_v35  ;;  %v912_v42 = vrot.slane %v881_v37, 2  ;;  %v961_v13 = vmul.f32 %v2530_v1, %v2678_v10  ;;  %1772 = vmatpush3.bf16.msra.mxu0 %v2562_v38  ;;  %v962_v45 = vmul.f32 %v2530_v1, %v2685_v29 }
  0xee   : > { %v832_v43 = vsel %vm820_vm2, %v830_v40, %v831_v41  ;;  %v863_v44 = vadd.f32 %v831_v41, %v781_v9  ;;  %v460_v52 = vmul.f32 %v2470_v19, %v2617_v46  ;;  %1797 = vmatprep.subr.bf16.mxu0 %v2171_v0  ;;  %v461_v56 = vmul.f32 %v2470_v19, %v2620_v47 }
  0xef   : > { %v862_v53 = vadd.f32 %v832_v43, %v780_v28  ;;  %v913_v54 = vsel %vm820_vm2, %v911_v12, %v912_v42  ;;  %v992_v55 = vrot.slane %v961_v13, 2  ;;  %v993_v59 = vrot.slane %v962_v45, 2 }
  0xf0   : > { %1786 = vmatpush3.bf16.msra.mxu1 %v2496_v31  ;;  %v944_v58 = vadd.f32 %v912_v42, %v863_v44  ;;  %v492_v17 = vmul.f32 %v2472_v20, %v2678_v10  ;;  %v493_v60 = vmul.f32 %v2472_v20, %v2685_v29  ;;  %1774 = vmatmul.mubr.bf16.vlgmr.msra.gmra.mrb[4].mxu0 %v1076_v34 }
  0xf1   : > { %1787 = vmatprep.subr.bf16.mxu1 %v2171_v0  ;;  %v943_v61 = vadd.f32 %v913_v54, %v862_v53  ;;  %v524_v62 = vmul.f32 %v2474_v21, %v2748_v50  ;;  %v525_v63 = vmul.f32 %v2474_v21, %v2751_v51  ;;  %1798 = vmatpush3.bf16.msra.mxu0 %v2435_v2 }
  0xf2   : > { %v994_v18 = vsel %vm820_vm2, %v992_v55, %v993_v59  ;;  %v1025_v6 = vadd.f32 %v993_v59, %v944_v58  ;;  %1813 = vmatprep.mubr.msk.bf16.mxu0 %vm2172_vm0, %v2171_v0  ;;  %v506_v7 = vadd.f32 %v492_v17, %v460_v52  ;;  %1799 = vmatprep.subr.bf16.mxu0 %v2171_v0 }
  0xf3   : > { %v1024_v11 = vadd.f32 %v994_v18, %v943_v61  ;;  %v507_v14 = vadd.f32 %v493_v60, %v461_v56  ;;  %v556_v15 = vmul.f32 %v2476_v22, %v2617_v46  ;;  %v557_v16 = vmul.f32 %v2476_v22, %v2620_v47 }
  0xf4   : > { %1788 = vmatpush3.bf16.msra.mxu1 %v2516_v48  ;;  %v1046_v27 = vmul.f32 %v2575_v49, %v1025_v6  ;;  %v538_v30 = vadd.f32 %v524_v62, %v506_v7  ;;  %v638_v32 = vmul.f32 %v2478_v23, %v2678_v10  ;;  %v639_v33 = vmul.f32 %v2478_v23, %v2685_v29 }
  0xf5   : > { %1789 = vmatprep.subr.bf16.mxu1 %v2171_v0  ;;  %v1045_v34 = vmul.f32 %v2575_v49, %v1024_v11  ;;  %v539_v35 = vadd.f32 %v525_v63, %v507_v14  ;;  %v589_v36 = vrot.slane %v556_v15, 1  ;;  %v590_v37 = vrot.slane %v557_v16, 1  ;;  %1800 = vmatpush3.bf16.msra.mxu0 %v2438_v3  ;;  %v2817_v16 = vld [vmem:[%s2415_s15] sm:$0xff] }
  0xf6   : > { %v1067_v39 = vadd.f32 %v2585_v57, %v1046_v27  ;;  %v670_v9 = vrot.slane %v638_v32, 1  ;;  %v671_v40 = vrot.slane %v639_v33, 1  ;;  %v719_v41 = vmul.f32 %v2480_v24, %v2748_v50  ;;  %1801 = vmatprep.subr.bf16.mxu0 %v2171_v0 }
  0xf7   : > { %v1066_v28 = vadd.f32 %v2585_v57, %v1045_v34  ;;  %v591_v12 = vsel %vm576_vm1, %v589_v36, %v590_v37  ;;  %v621_v42 = vadd.f32 %v590_v37, %v539_v35  ;;  %v720_v13 = vmul.f32 %v2480_v24, %v2751_v51  ;;  %v2824_v34 = vld [vmem:[%s2415_s15 + $0x8] sm:$0xff] }
  0xf8   : > { %1790 = vmatpush3.bf16.msra.mxu1 %v2534_v4  ;;  %v620_v43 = vadd.f32 %v591_v12, %v538_v30  ;;  %v672_v44 = vsel %vm576_vm1, %v670_v9, %v671_v40  ;;  %v751_v45 = vrot.slane %v719_v41, 1  ;;  %v800_v52 = vmul.f32 %v2483_v25, %v2617_v46 }
  0xf9   : > { %1791 = vmatprep.subr.bf16.mxu1 %v2171_v0  ;;  %v1077_v53 = vpack.c.bf16 %v1067_v39, %v1066_v28  ;;  %v702_v54 = vadd.f32 %v671_v40, %v621_v42  ;;  %v752_v55 = vrot.slane %v720_v13, 1  ;;  %v801_v56 = vmul.f32 %v2483_v25, %v2620_v47  ;;  %1802 = vmatpush3.bf16.msra.mxu0 %v2444_v5 }
  0xfa   : > { %v701_v58 = vadd.f32 %v672_v44, %v620_v43  ;;  %v833_v59 = vrot.slane %v800_v52, 2  ;;  %v882_v17 = vmul.f32 %v2486_v26, %v2678_v10  ;;  %v883_v60 = vmul.f32 %v2486_v26, %v2685_v29  ;;  %1803 = vmatprep.subr.bf16.mxu0 %v2171_v0 }
  0xfb   : > { %v753_v46 = vsel %vm576_vm1, %v751_v45, %v752_v55  ;;  %v783_v61 = vadd.f32 %v752_v55, %v702_v54  ;;  %v834_v62 = vrot.slane %v801_v56, 2  ;;  %v963_v47 = vmul.f32 %v2530_v1, %v2748_v50 }
  0xfc   : > { %1792 = vmatpush3.bf16.msra.mxu1 %v2562_v38  ;;  %v782_v63 = vadd.f32 %v753_v46, %v701_v58  ;;  %v914_v18 = vrot.slane %v882_v17, 2  ;;  %v915_v6 = vrot.slane %v883_v60, 2  ;;  %v964_v7 = vmul.f32 %v2530_v1, %v2751_v51 }
  0xfd   : > { %1817 = vmatprep.subr.bf16.mxu1 %v2171_v0  ;;  %v835_v11 = vsel %vm820_vm2, %v833_v59, %v834_v62  ;;  %v865_v14 = vadd.f32 %v834_v62, %v783_v61  ;;  %v995_v15 = vrot.slane %v963_v47, 2  ;;  %v462_v27 = vmul.f32 %v2470_v19, %v2678_v10  ;;  %1804 = vmatpush3.bf16.msra.mxu0 %v2449_v8 }
  0xfe   : > { %v864_v30 = vadd.f32 %v835_v11, %v782_v63  ;;  %v916_v32 = vsel %vm820_vm2, %v914_v18, %v915_v6  ;;  %v996_v33 = vrot.slane %v964_v7, 2  ;;  %v463_v35 = vmul.f32 %v2470_v19, %v2685_v29  ;;  %1805 = vmatprep.subr.bf16.mxu0 %v2171_v0 }
  0xff   : > { %1794 = vmatmul.mubr.bf16.vlgmr.msra.gmra.mrb[4].mxu1 %v1077_v53  ;;  %v946_v36 = vadd.f32 %v915_v6, %v865_v14  ;;  %v494_v37 = vmul.f32 %v2472_v20, %v2748_v50  ;;  %v495_v39 = vmul.f32 %v2472_v20, %v2751_v51  ;;  %v526_v41 = vmul.f32 %v2474_v21, %v2817_v16 }
 0x100   : > { %1818 = vmatpush3.bf16.msra.mxu1 %v2435_v2  ;;  %v945_v9 = vadd.f32 %v916_v32, %v864_v30  ;;  %v997_v40 = vsel %vm820_vm2, %v995_v15, %v996_v33  ;;  %1833 = vmatprep.mubr.msk.bf16.mxu1 %vm2172_vm0, %v2171_v0  ;;  %v527_v13 = vmul.f32 %v2474_v21, %v2824_v34 }
 0x101   : > { %v1027_v28 = vadd.f32 %v996_v33, %v946_v36  ;;  %1819 = vmatprep.subr.bf16.mxu1 %v2171_v0  ;;  %v508_v12 = vadd.f32 %v494_v37, %v462_v27  ;;  %v509_v42 = vadd.f32 %v495_v39, %v463_v35  ;;  %1806 = vmatpush3.bf16.msra.mxu0 %v2496_v31 }
 0x102   : > { %v1026_v43 = vadd.f32 %v997_v40, %v945_v9  ;;  %v558_v44 = vmul.f32 %v2476_v22, %v2678_v10  ;;  %v559_v45 = vmul.f32 %v2476_v22, %v2685_v29  ;;  %v640_v52 = vmul.f32 %v2478_v23, %v2748_v50  ;;  %1807 = vmatprep.subr.bf16.mxu0 %v2171_v0 }
 0x103   : > { %v1048_v53 = vmul.f32 %v2575_v49, %v1027_v28  ;;  %v540_v54 = vadd.f32 %v526_v41, %v508_v12  ;;  %v541_v55 = vadd.f32 %v527_v13, %v509_v42  ;;  %v641_v56 = vmul.f32 %v2478_v23, %v2751_v51  ;;  %v2884_v12 = vld [vmem:[%s2415_s15 + $0x10] sm:$0xff] }
 0x104   : > { %v1047_v58 = vmul.f32 %v2575_v49, %v1026_v43  ;;  %1820 = vmatpush3.bf16.msra.mxu1 %v2438_v3  ;;  %v592_v59 = vrot.slane %v558_v44, 1  ;;  %v593_v17 = vrot.slane %v559_v45, 1  ;;  %v673_v60 = vrot.slane %v640_v52, 1  ;;  %v2891_v52 = vld [vmem:[%s2415_s15 + $0x18] sm:$0xff] }
 0x105   : > { %v1069_v46 = vadd.f32 %v2585_v57, %v1048_v53  ;;  %1821 = vmatprep.subr.bf16.mxu1 %v2171_v0  ;;  %v674_v61 = vrot.slane %v641_v56, 1  ;;  %v721_v62 = vmul.f32 %v2480_v24, %v2817_v16  ;;  %v722_v47 = vmul.f32 %v2480_v24, %v2824_v34  ;;  %1808 = vmatpush3.bf16.msra.mxu0 %v2516_v48 }
 0x106   : > { %v1068_v63 = vadd.f32 %v2585_v57, %v1047_v58  ;;  %v594_v3 = vsel %vm576_vm1, %v592_v59, %v593_v17  ;;  %v623_v18 = vadd.f32 %v593_v17, %v541_v55  ;;  %v802_v6 = vmul.f32 %v2483_v25, %v2678_v10  ;;  %1809 = vmatprep.subr.bf16.mxu0 %v2171_v0 }
 0x107   : > { %v622_v7 = vadd.f32 %v594_v3, %v540_v54  ;;  %v675_v11 = vsel %vm576_vm1, %v673_v60, %v674_v61  ;;  %v754_v14 = vrot.slane %v721_v62, 1  ;;  %v755_v15 = vrot.slane %v722_v47, 1 }
 0x108   : > { %v1078_v27 = vpack.c.bf16 %v1069_v46, %v1068_v63  ;;  %1822 = vmatpush3.bf16.msra.mxu1 %v2444_v5  ;;  %v704_v30 = vadd.f32 %v674_v61, %v623_v18  ;;  %v803_v32 = vmul.f32 %v2483_v25, %v2685_v29  ;;  %v836_v33 = vrot.slane %v802_v6, 2 }
 0x109   : > { %1823 = vmatprep.subr.bf16.mxu1 %v2171_v0  ;;  %v703_v35 = vadd.f32 %v675_v11, %v622_v7  ;;  %v756_v10 = vsel %vm576_vm1, %v754_v14, %v755_v15  ;;  %v884_v36 = vmul.f32 %v2486_v26, %v2748_v50  ;;  %v885_v37 = vmul.f32 %v2486_v26, %v2751_v51 }
 0x10a   : > { %1810 = vmatpush3.bf16.msra.mxu0 %v2534_v4  ;;  %v785_v5 = vadd.f32 %v755_v15, %v704_v30  ;;  %v837_v39 = vrot.slane %v803_v32, 2  ;;  %v965_v29 = vmul.f32 %v2530_v1, %v2817_v16  ;;  %v966_v9 = vmul.f32 %v2530_v1, %v2824_v34 }
 0x10b   : > { %1811 = vmatprep.subr.bf16.mxu0 %v2171_v0  ;;  %v784_v40 = vadd.f32 %v756_v10, %v703_v35  ;;  %v917_v41 = vrot.slane %v884_v36, 2  ;;  %v918_v28 = vrot.slane %v885_v37, 2  ;;  %v464_v42 = vmul.f32 %v2470_v19, %v2748_v50 }
 0x10c   : > { %1824 = vmatpush3.bf16.msra.mxu1 %v2449_v8  ;;  %v838_v13 = vsel %vm820_vm2, %v836_v33, %v837_v39  ;;  %v867_v43 = vadd.f32 %v837_v39, %v785_v5  ;;  %v998_v44 = vrot.slane %v965_v29, 2  ;;  %v999_v45 = vrot.slane %v966_v9, 2  ;;  %v1964_v5 = vld [vmem:[#allocation8 + $0x8] sm:$0xff]  }
 0x10d   : > { %1825 = vmatprep.subr.bf16.mxu1 %v2171_v0  ;;  %v866_v53 = vadd.f32 %v838_v13, %v784_v40  ;;  %v919_v54 = vsel %vm820_vm2, %v917_v41, %v918_v28  ;;  %v465_v55 = vmul.f32 %v2470_v19, %v2751_v51  ;;  %v496_v56 = vmul.f32 %v2472_v20, %v2817_v16 }
 0x10e   : > { %1812 = vmatpush3.bf16.msra.mxu0 %v2562_v38  ;;  %v948_v8 = vadd.f32 %v918_v28, %v867_v43  ;;  %v1000_v58 = vsel %vm820_vm2, %v998_v44, %v999_v45  ;;  %v497_v59 = vmul.f32 %v2472_v20, %v2824_v34  ;;  %v528_v17 = vmul.f32 %v2474_v21, %v2884_v12 }
 0x10f   : > { %1837 = vmatprep.subr.bf16.mxu0 %v2171_v0  ;;  %v947_v60 = vadd.f32 %v919_v54, %v866_v53  ;;  %v510_v46 = vadd.f32 %v496_v56, %v464_v42  ;;  %v529_v19 = vmul.f32 %v2474_v21, %v2891_v52  ;;  %v560_v61 = vmul.f32 %v2476_v22, %v2748_v50  ;;  %v1965_v53 = vld [vmem:[#allocation8 + $0x10] sm:$0xff]  }
 0x110   : > { %1826 = vmatpush3.bf16.msra.mxu1 %v2496_v31  ;;  %v1029_v62 = vadd.f32 %v999_v45, %v948_v8  ;;  %v511_v47 = vadd.f32 %v497_v59, %v465_v55  ;;  %v561_v20 = vmul.f32 %v2476_v22, %v2751_v51  ;;  %v642_v63 = vmul.f32 %v2478_v23, %v2817_v16 }
 0x111   : > { %1814 = vmatmul.mubr.bf16.vlgmr.msra.gmra.mrb[8].mxu0 %v1078_v27  ;;  %1827 = vmatprep.subr.bf16.mxu1 %v2171_v0  ;;  %v1028_v3 = vadd.f32 %v1000_v58, %v947_v60  ;;  %v542_v18 = vadd.f32 %v528_v17, %v510_v46  ;;  %v595_v6 = vrot.slane %v560_v61, 1  ;;  %v643_v21 = vmul.f32 %v2478_v23, %v2824_v34  ;;  %v1966_v17 = vld [vmem:[#allocation8 + $0x18] sm:$0xff]  }
 0x112   : > { %1838 = vmatpush3.bf16.msra.mxu0 %v2435_v2  ;;  %v1050_v7 = vmul.f32 %v2575_v49, %v1029_v62  ;;  %1853 = vmatprep.mubr.msk.bf16.mxu0 %vm2172_vm0, %v2171_v0  ;;  %v543_v22 = vadd.f32 %v529_v19, %v511_v47  ;;  %v596_v11 = vrot.slane %v561_v20, 1  ;;  %v676_v14 = vrot.slane %v642_v63, 1 }
 0x113   : > { %1839 = vmatprep.subr.bf16.mxu0 %v2171_v0  ;;  %v1049_v15 = vmul.f32 %v2575_v49, %v1028_v3  ;;  %v677_v27 = vrot.slane %v643_v21, 1  ;;  %v723_v30 = vmul.f32 %v2480_v24, %v2884_v12  ;;  %v724_v23 = vmul.f32 %v2480_v24, %v2891_v52 }
 0x114   : > { %1828 = vmatpush3.bf16.msra.mxu1 %v2516_v48  ;;  %v597_v2 = vsel %vm576_vm1, %v595_v6, %v596_v11  ;;  %v625_v32 = vadd.f32 %v596_v11, %v543_v22  ;;  %v804_v33 = vmul.f32 %v2483_v25, %v2748_v50  ;;  %v1071_v35 = vadd.f32 %v2585_v57, %v1050_v7 }
 0x115   : > { %1829 = vmatprep.subr.bf16.mxu1 %v2171_v0  ;;  %v624_v10 = vadd.f32 %v597_v2, %v542_v18  ;;  %v678_v36 = vsel %vm576_vm1, %v676_v14, %v677_v27  ;;  %v757_v37 = vrot.slane %v723_v30, 1  ;;  %v758_v24 = vrot.slane %v724_v23, 1 }
 0x116   : > { %1840 = vmatpush3.bf16.msra.mxu0 %v1964_v5  ;;  %v706_v39 = vadd.f32 %v677_v27, %v625_v32  ;;  %v805_v29 = vmul.f32 %v2483_v25, %v2751_v51  ;;  %v839_v9 = vrot.slane %v804_v33, 2  ;;  %v1070_v50 = vadd.f32 %v2585_v57, %v1049_v15 }
 0x117   : > { %1841 = vmatprep.subr.bf16.mxu0 %v2171_v0  ;;  %v705_v40 = vadd.f32 %v678_v36, %v624_v10  ;;  %v886_v41 = vmul.f32 %v2486_v26, %v2817_v16  ;;  %v887_v28 = vmul.f32 %v2486_v26, %v2824_v34  ;;  %v759_v42 = vsel %vm576_vm1, %v757_v37, %v758_v24 }
 0x118   : > { %1830 = vmatpush3.bf16.msra.mxu1 %v2534_v4  ;;  %v787_v13 = vadd.f32 %v758_v24, %v706_v39  ;;  %v840_v43 = vrot.slane %v805_v29, 2  ;;  %v967_v25 = vmul.f32 %v2530_v1, %v2884_v12  ;;  %v968_v16 = vmul.f32 %v2530_v1, %v2891_v52 }
 0x119   : > { %1831 = vmatprep.subr.bf16.mxu1 %v2171_v0  ;;  %v786_v51 = vadd.f32 %v759_v42, %v705_v40  ;;  %v920_v44 = vrot.slane %v886_v41, 2  ;;  %v921_v45 = vrot.slane %v887_v28, 2  ;;  %v1079_v55 = vpack.c.bf16 %v1071_v35, %v1070_v50 }
 0x11a   : > { %1842 = vmatpush3.bf16.msra.mxu0 %v1965_v53  ;;  %v841_v26 = vsel %vm820_vm2, %v839_v9, %v840_v43  ;;  %v869_v34 = vadd.f32 %v840_v43, %v787_v13  ;;  %v1001_v54 = vrot.slane %v967_v25, 2  ;;  %v1002_v8 = vrot.slane %v968_v16, 2 }
 0x11b   : > { %1843 = vmatprep.subr.bf16.mxu0 %v2171_v0  ;;  %v868_v56 = vadd.f32 %v841_v26, %v786_v51  ;;  %v922_v12 = vsel %vm820_vm2, %v920_v44, %v921_v45 }
 0x11c   : > { %1832 = vmatpush3.bf16.msra.mxu1 %v2562_v38  ;;  %v950_v59 = vadd.f32 %v921_v45, %v869_v34  ;;  %v1003_v1 = vsel %vm820_vm2, %v1001_v54, %v1002_v8 }
 0x11d   : > { %v949_v58 = vadd.f32 %v922_v12, %v868_v56 }
 0x11e   : > { %1844 = vmatpush3.bf16.msra.mxu0 %v1966_v17  ;;  %v1031_v60 = vadd.f32 %v1002_v8, %v950_v59 }
 0x11f   : > { %1845 = vmatprep.subr.bf16.mxu0 %v2171_v0  ;;  %1834 = vmatmul.mubr.bf16.vlgmr.msra.gmra.mrb[8].mxu1 %v1079_v55  ;;  %v1030_v52 = vadd.f32 %v1003_v1, %v949_v58 }
 0x120   : > { %v1052_v19 = vmul.f32 %v2575_v49, %v1031_v60 }
 0x121   : > { %v1051_v46 = vmul.f32 %v2575_v49, %v1030_v52 }
 0x122   : > { %1846 = vmatpush3.bf16.msra.mxu0 %v2496_v31  ;;  %v1073_v62 = vadd.f32 %v2585_v57, %v1052_v19 }
 0x123   : > { %1847 = vmatprep.subr.bf16.mxu0 %v2171_v0  ;;  %v1072_v61 = vadd.f32 %v2585_v57, %v1051_v46 }
 0x125   : > { %v1080_v31 = vpack.c.bf16 %v1073_v62, %v1072_v61 }
 0x126   : > { %1848 = vmatpush3.bf16.msra.mxu0 %v2516_v48 }
 0x127   : > { %1849 = vmatprep.subr.bf16.mxu0 %v2171_v0 }
 0x12a   : > { %1850 = vmatpush3.bf16.msra.mxu0 %v2534_v4 }
 0x12b   : > { %1851 = vmatprep.subr.bf16.mxu0 %v2171_v0 }
 0x12e   : > { %1852 = vmatpush3.bf16.msra.mxu0 %v2562_v38 }
 0x131   : > { %1854 = vmatmul.mubr.bf16.vlgmr.msra.gmra.mrb[12].mxu0 %v1080_v31 }
 0x1a3   : > { %v1179_v0 = vpop.f32.mrb[0].mxu0 }
 0x1a4   : > { %1186 = vst [vmem:[%s2973_s19] sm:$0xff] %v1179_v0  ;;  %v1735_v48 = vpop.f32.mrb[1].mxu0 }
 0x1a5   : > { %v1182_v4 = vpop.f32.mrb[2].mxu0 }
 0x1a6   : > { %1187 = vst [vmem:[%s2973_s19 + $0x8] sm:$0x3f] %v1182_v4  ;;  %v1736_v38 = vpop.f32.mrb[3].mxu0 }
 0x1b2   : > { %v1222_v49 = vpop.f32.mrb[0].mxu1 }
 0x1b3   : > { %1636 = vst [vmem:[%s2973_s19 + $0x10] sm:$0xff] %v1222_v49  ;;  %v1755_v57 = vpop.f32.mrb[1].mxu1 }
 0x1b4   : > { %v1225_v47 = vpop.f32.mrb[2].mxu1 }
 0x1b5   : > { %1637 = vst [vmem:[%s2973_s19 + $0x18] sm:$0x3f] %v1225_v47  ;;  %v1756_v20 = vpop.f32.mrb[3].mxu1 }
 0x1c3   : > { %v1266_v63 = vpop.f32.mrb[4].mxu0 }
 0x1c4   : > { %1638 = vst [vmem:[%s2973_s19 + $0x20] sm:$0xff] %v1266_v63  ;;  %v1775_v3 = vpop.f32.mrb[5].mxu0 }
 0x1c5   : > { %v1269_v18 = vpop.f32.mrb[6].mxu0 }
 0x1c6   : > { %1639 = vst [vmem:[%s2973_s19 + $0x28] sm:$0x3f] %v1269_v18  ;;  %v1776_v6 = vpop.f32.mrb[7].mxu0 }
 0x1d2   : > { %v1310_v21 = vpop.f32.mrb[4].mxu1 }
 0x1d3   : > { %1640 = vst [vmem:[%s2973_s19 + $0x30] sm:$0xff] %v1310_v21  ;;  %v1795_v7 = vpop.f32.mrb[5].mxu1 }
 0x1d4   : > { %v1313_v22 = vpop.f32.mrb[6].mxu1 }
 0x1d5   : > { %1641 = vst [vmem:[%s2973_s19 + $0x38] sm:$0x3f] %v1313_v22  ;;  %v1796_v11 = vpop.f32.mrb[7].mxu1 }
 0x1e4   : > { %v1354_v14 = vpop.f32.mrb[8].mxu0 }
 0x1e5   : > { %1642 = vst [vmem:[%s2973_s19 + $0x40] sm:$0xff] %v1354_v14  ;;  %v1815_v15 = vpop.f32.mrb[9].mxu0 }
 0x1e6   : > { %v1357_v27 = vpop.f32.mrb[10].mxu0 }
 0x1e7   : > { %1643 = vst [vmem:[%s2973_s19 + $0x48] sm:$0x3f] %v1357_v27  ;;  %v1816_v30 = vpop.f32.mrb[11].mxu0 }
 0x1f2   : > { %v1398_v23 = vpop.f32.mrb[8].mxu1 }
 0x1f3   : > { %1644 = vst [vmem:[%s2973_s19 + $0x50] sm:$0xff] %v1398_v23  ;;  %v1835_v2 = vpop.f32.mrb[9].mxu1 }
 0x1f4   : > { %v1401_v32 = vpop.f32.mrb[10].mxu1 }
 0x1f5   : > { %1645 = vst [vmem:[%s2973_s19 + $0x58] sm:$0x3f] %v1401_v32  ;;  %v1836_v33 = vpop.f32.mrb[11].mxu1 }
 0x204   : > { %v1442_v35 = vpop.f32.mrb[12].mxu0 }
 0x205   : > { %1646 = vst [vmem:[%s2973_s19 + $0x60] sm:$0xff] %v1442_v35  ;;  %v1855_v10 = vpop.f32.mrb[13].mxu0 }
 0x206   : > { %v1445_v36 = vpop.f32.mrb[14].mxu0 }
 0x207   : > { %1647 = vst [vmem:[%s2973_s19 + $0x68] sm:$0x3f] %v1445_v36  ;;  %v1856_v37 = vpop.f32.mrb[15].mxu0 }
 0x208 PF: > { %s23_s28 = sadd.s32 1, %s2159_s28   ;;  %s3051_s24 = sld [smem:[#allocation17_spill]] }
 0x209   : > { %p20_p3 = scmp.ge.s32.totalorder %s23_s28, 6   ;;  %s3052_s18 = sld [smem:[#allocation15_spill]] }
 0x20a   : > { %s3053_s2 = sld [smem:[#allocation16_spill]]  ;;  %s3054_s21 = smov %s2135_s22 }
 0x20b   : > { %s3055_s22 = smov %s2139_s23  ;;  %s3058_s25 = smov %s2155_s27 }
 0x20c   :  { %22 = sbr.rel (!%p20_p3) target bundleno = 12 (0xc), region = 112 }
 0x20e   : > { %s3056_s23 = smov %s3051_s24  ;;  %s3057_s24 = smov %s2151_s26 }
 0x20f   : > { %s3059_s26 = smov %s3052_s18 }
 0x210   : > { %s3060_s27 = smov %s3053_s2 }
 0x213   :  { %1484 = vsyncpa [#allocation4], 1 }
 0x214   :  { %1486 = vsyncpa [#allocation4 + $0x1], 1 }
 0x215   :  { %1487 = vsyncpa [#allocation6], 1 }
 0x216   :  { %1489 = vsyncpa [#allocation6 + $0x1], 1 }
 0x217   :  { %1490 = vsyncpa [#allocation9], 1 }

</bundles_post_ra>
